<compile_context>
chip_gen: v7x
topology: tpu7x:2x2x1
jax: 0.10.0
libtpu: 0.0.40
codegen_flags: <defaults>
</compile_context>

<pallas_src>
import functools

import jax
import jax.numpy as jnp
from jax.experimental import pallas as pl
from jax.experimental.pallas import tpu as pltpu


# ----------------------------------------------------------------------------
# helpers
# ----------------------------------------------------------------------------
def _round_up(x, m):
    return (x + m - 1) // m * m


def _pick_tm(m, tm_max=1024):
    """Row-tile size: exact single block for small M, 1024-row tiles otherwise."""
    if m <= tm_max:
        return m if m % 8 == 0 else _round_up(m, 16)
    return tm_max  # multiple of 16 -> valid second-minor block dim for bf16/f32


# ----------------------------------------------------------------------------
# Pallas kernels
# ----------------------------------------------------------------------------
def _matmul_bias_act_kernel(x_ref, w_ref, b_ref, o_ref, *, relu):
    # bf16 x bf16 -> f32 on the MXU; bias + ReLU in f32 (v5e-safe VPU math).
    acc = jnp.dot(x_ref[...], w_ref[...], preferred_element_type=jnp.float32)
    acc = acc + b_ref[...]
    if relu:
        acc = jnp.maximum(acc, 0.0)
    o_ref[...] = acc.astype(o_ref.dtype)


def _matmul_bias_act(cols, w, b, *, relu, out_dtype, tm_max=1024):
    """(M,K) @ (K,N) + bias (+ReLU), M-tiled and pipelined.

    The activation columns stream through VMEM in `tm`-row blocks while the
    (tiny) weight matrix and bias stay resident (constant index_map).
    """
    M, K = cols.shape
    K2, N = w.shape
    assert K == K2
    tm = _pick_tm(M, tm_max)
    grid = (pl.cdiv(M, tm),)

    bytes_accessed = (M * K * cols.dtype.itemsize + K * N * w.dtype.itemsize
                      + N * 4 + M * N * jnp.dtype(out_dtype).itemsize)

    return pl.pallas_call(
        functools.partial(_matmul_bias_act_kernel, relu=relu),
        out_shape=jax.ShapeDtypeStruct((M, N), out_dtype),
        grid=grid,
        in_specs=[
            pl.BlockSpec((tm, K), lambda i: (i, 0)),   # activations: streamed
            pl.BlockSpec((K, N), lambda i: (0, 0)),    # weights: VMEM-resident
            pl.BlockSpec((1, N), lambda i: (0, 0)),    # bias:    VMEM-resident
        ],
        out_specs=pl.BlockSpec((tm, N), lambda i: (i, 0)),
        compiler_params=pltpu.CompilerParams(
            dimension_semantics=("parallel",),          # megacore sharding (v7x)
            vmem_limit_bytes=32 * 1024 * 1024,
        ),
        cost_estimate=pl.CostEstimate(
            flops=2 * M * K * N, transcendentals=0, bytes_accessed=bytes_accessed),
    )(cols, w, b.reshape(1, N).astype(jnp.float32))


def _head_kernel(bin_ref, inst_ref, pred_ref, sig_ref):
    # argmax(softmax(x), dim=class) == argmax(x): for 2 classes a single
    # compare (tie -> class 0, matching torch.argmax's first-max rule).
    b = bin_ref[...]                                     # (1, 2, TH, W) f32
    pred_ref[...] = jnp.where(b[:, 1:2, :, :] > b[:, 0:1, :, :],
                              jnp.int32(1), jnp.int32(0))
    x = inst_ref[...]                                    # (1, 3, TH, W) f32
    sig_ref[...] = 1.0 / (1.0 + jnp.exp(-x))             # sigmoid (EUP)


def _head(binary_nchw, instance_nchw):
    """Fused head on NCHW tensors: W is the lane-dense minor dim."""
    N, Cb, H, W = binary_nchw.shape
    Ci = instance_nchw.shape[1]
    th = H if H <= 128 else 128
    grid = (N, pl.cdiv(H, th))

    m = N * H * W
    pred, sig = pl.pallas_call(
        _head_kernel,
        out_shape=(jax.ShapeDtypeStruct((N, 1, H, W), jnp.int32),
                   jax.ShapeDtypeStruct((N, Ci, H, W), jnp.float32)),
        grid=grid,
        in_specs=[
            pl.BlockSpec((1, Cb, th, W), lambda n, i: (n, 0, i, 0)),
            pl.BlockSpec((1, Ci, th, W), lambda n, i: (n, 0, i, 0)),
        ],
        out_specs=(
            pl.BlockSpec((1, 1, th, W), lambda n, i: (n, 0, i, 0)),
            pl.BlockSpec((1, Ci, th, W), lambda n, i: (n, 0, i, 0)),
        ),
        compiler_params=pltpu.CompilerParams(
            dimension_semantics=("parallel", "parallel"),
            vmem_limit_bytes=32 * 1024 * 1024,
        ),
        cost_estimate=pl.CostEstimate(
            flops=m * (Cb + 3 * Ci),
            transcendentals=m * Ci,
            bytes_accessed=m * 4 * (Cb + 2 * Ci + 1)),
    )(binary_nchw, instance_nchw)
    return pred, sig


# ----------------------------------------------------------------------------
# Convolution glue: column gather in JAX (data movement), matmul in Pallas.
# ----------------------------------------------------------------------------
def _conv_cols(x_nhwc, kh, kw, stride, pad, upsample_in):
    """im2col column gather.

    If `upsample_in`, the columns are gathered *as if* the input had first been
    nearest-2x upsampled — the 4x tensor is never materialized (fused upsample).
    """
    N, H, W, C = x_nhwc.shape
    xp = jnp.pad(x_nhwc, ((0, 0), (pad, pad), (pad, pad), (0, 0)))
    if upsample_in:
        assert stride == 1 and pad == 1
        Hout, Wout = 2 * H, 2 * W
        # padded-upsampled coord a maps to padded-source row (a-1)//2 + 1
        rowsel = (jnp.arange(Hout)[:, None] + jnp.arange(kh)[None, :] - 1) // 2 + 1
        colsel = (jnp.arange(Wout)[:, None] + jnp.arange(kw)[None, :] - 1) // 2 + 1
    else:
        Hout = (H + 2 * pad - kh) // stride + 1
        Wout = (W + 2 * pad - kw) // stride + 1
        rowsel = jnp.arange(Hout)[:, None] * stride + jnp.arange(kh)[None, :]
        colsel = jnp.arange(Wout)[:, None] * stride + jnp.arange(kw)[None, :]

    g = jnp.take(xp, rowsel, axis=1)                 # (N, Hout, KH, Wp, C)
    g = jnp.take(g, colsel, axis=3)                  # (N, Hout, KH, Wout, KW, C)
    g = jnp.transpose(g, (0, 1, 3, 2, 4, 5))         # (N, Hout, Wout, KH, KW, C)
    return g.reshape(N * Hout * Wout, kh * kw * C), (N, Hout, Wout)


def conv2d(x_nhwc, w, b, *, stride=1, pad=1, relu=True,
           out_dtype=jnp.bfloat16, upsample_in=False):
    # x: (N,H,W,Cin)   w: (kh,kw,Cin,Cout)   b: (Cout,)
    kh, kw, cin, cout = w.shape
    cols, (N, Hout, Wout) = _conv_cols(x_nhwc.astype(jnp.bfloat16),
                                       kh, kw, stride, pad, upsample_in)
    w2 = w.reshape(kh * kw * cin, cout).astype(jnp.bfloat16)
    out = _matmul_bias_act(cols, w2, b, relu=relu, out_dtype=out_dtype)
    return out.reshape(N, Hout, Wout, cout)


# ----------------------------------------------------------------------------
# LaneNet model (simplified ENet encoder / fused decoders)
# ----------------------------------------------------------------------------
def init_params(key, in_ch=3):
    def conv_w(k, kh, kw, cin, cout):
        fan_in = kh * kw * cin
        return jax.random.normal(k, (kh, kw, cin, cout), jnp.float32) / jnp.sqrt(fan_in)

    ks = jax.random.split(key, 9)
    params = {
        "enc1_w": conv_w(ks[0], 3, 3, in_ch, 16), "enc1_b": jnp.zeros((16,), jnp.float32),
        "enc2_w": conv_w(ks[1], 3, 3, 16, 32),    "enc2_b": jnp.zeros((32,), jnp.float32),
        "enc3_w": conv_w(ks[2], 3, 3, 32, 64),    "enc3_b": jnp.zeros((64,), jnp.float32),
    }

    def dec(k0, k1, k2, ncls):
        return {
            "w1": conv_w(k0, 3, 3, 64, 32), "b1": jnp.zeros((32,), jnp.float32),
            "w2": conv_w(k1, 3, 3, 32, 16), "b2": jnp.zeros((16,), jnp.float32),
            "w3": conv_w(k2, 3, 3, 16, ncls), "b3": jnp.zeros((ncls,), jnp.float32),
        }

    params["dec_bin"] = dec(ks[3], ks[4], ks[5], 2)    # binary head (2 classes)
    params["dec_inst"] = dec(ks[6], ks[7], ks[8], 3)   # instance head (3 channels)
    return params


def _fused_decoder_weights(pb, pi):
    """Fuse the two decoders into one pass (stage1: concat Cout; later stages:
    block-diagonal weights so the bin/inst channel groups never mix)."""
    w1 = jnp.concatenate([pb["w1"], pi["w1"]], axis=-1)          # (3,3,64,64)
    b1 = jnp.concatenate([pb["b1"], pi["b1"]], axis=-1)

    def blockdiag(wb, wi):
        kh, kw, cb_in, cb_out = wb.shape
        _, _, ci_in, ci_out = wi.shape
        w = jnp.zeros((kh, kw, cb_in + ci_in, cb_out + ci_out), wb.dtype)
        w = w.at[:, :, :cb_in, :cb_out].set(wb)
        w = w.at[:, :, cb_in:, cb_out:].set(wi)
        return w

    w2 = blockdiag(pb["w2"], pi["w2"])                           # (3,3,64,32)
    b2 = jnp.concatenate([pb["b2"], pi["b2"]], axis=-1)
    w3 = blockdiag(pb["w3"], pi["w3"])                           # (3,3,32,5)
    b3 = jnp.concatenate([pb["b3"], pi["b3"]], axis=-1)
    return (w1, b1), (w2, b2), (w3, b3)


def lanenet_forward(x_nchw, params):
    x = jnp.transpose(x_nchw, (0, 2, 3, 1))                      # NCHW -> NHWC

    # ---- encoder: 3x (3x3 stride-2 conv + ReLU), bf16 activations ----------
    x = conv2d(x, params["enc1_w"], params["enc1_b"], stride=2)
    x = conv2d(x, params["enc2_w"], params["enc2_b"], stride=2)
    c = conv2d(x, params["enc3_w"], params["enc3_b"], stride=2)

    # ---- fused binary+instance decoder (single pass over shared features) --
    (w1, b1), (w2, b2), (w3, b3) = _fused_decoder_weights(
        params["dec_bin"], params["dec_inst"])
    d = conv2d(c, w1, b1, relu=True)                              # (N, h,  w,  64)
    d = conv2d(d, w2, b2, relu=True, upsample_in=True)            # (N, 2h, 2w, 32)
    d = conv2d(d, w3, b3, relu=False, upsample_in=True,
               out_dtype=jnp.float32)                             # (N, 4h, 4w, 5)

    # split heads and go NCHW: W becomes the lane-dense minor dim for the head.
    binary_q = jnp.transpose(d[..., :2], (0, 3, 1, 2))            # (N, 2, Hq, Wq)
    instance_q = jnp.transpose(d[..., 2:], (0, 3, 1, 2))          # (N, 3, Hq, Wq)

    # head at half of the final resolution; the trailing nearest-2x upsample
    # commutes with the pointwise argmax/sigmoid, so results are identical.
    pred_q, sig_q = _head(binary_q, instance_q)

    def up2_nchw(t):  # nearest-neighbor 2x (pure data movement, left to XLA)
        return jnp.repeat(jnp.repeat(t, 2, axis=2), 2, axis=3)

    return {
        "instance_seg_logits": up2_nchw(sig_q),                   # (N, 3, H, W) f32
        "binary_seg_pred": up2_nchw(pred_q),                      # (N, 1, H, W) int32
        "binary_seg_logits": up2_nchw(binary_q),                  # (N, 2, H, W) f32
    }


# ----------------------------------------------------------------------------
if __name__ == "__main__":
    key = jax.random.PRNGKey(0)
    k_param, k_in = jax.random.split(key)
    params = init_params(k_param, in_ch=3)
    x = jax.random.normal(k_in, (2, 3, 16, 16), jnp.float32)      # NCHW, like PyTorch

    out = jax.jit(lanenet_forward)(x, params)
    jax.block_until_ready(out)

    assert out["instance_seg_logits"].shape == (2, 3, 16, 16)
    assert out["instance_seg_logits"].dtype == jnp.float32
    assert out["binary_seg_pred"].shape == (2, 1, 16, 16)
    assert out["binary_seg_logits"].shape == (2, 2, 16, 16)
    print("KERNEL_OK")
</pallas_src>

<mosaic_0001>
module attributes {stable_mosaic.version = 11 : i64} {
  func.func @_matmul_bias_act_kernel(%arg0: i32, %arg1: memref<128x27xbf16, #tpu.memory_space<vmem>>, %arg2: memref<27x16xbf16, #tpu.memory_space<vmem>>, %arg3: memref<1x16xf32, #tpu.memory_space<vmem>>, %arg4: memref<128x16xbf16, #tpu.memory_space<vmem>>) attributes {dimension_semantics = [#tpu.dimension_semantics<parallel>], iteration_bounds = array<i64: 1>, scalar_prefetch = 0 : i64, scratch_operands = 0 : i64, tpu.core_type = #tpu.core_type<tc>, window_params = [{transform_indices = @transform_0, window_bounds = array<i64: 128, 27>}, {pipeline_mode = #tpu.pipeline_mode<synchronous>, transform_indices = @transform_1, window_bounds = array<i64: 27, 16>}, {pipeline_mode = #tpu.pipeline_mode<synchronous>, transform_indices = @transform_2, window_bounds = array<i64: 1, 16>}, {transform_indices = @transform_3, window_bounds = array<i64: 128, 16>}]} {
    %c0 = arith.constant 0 : index
    %c0_0 = arith.constant 0 : index
    %0 = vector.load %arg1[%c0, %c0_0] : memref<128x27xbf16, #tpu.memory_space<vmem>>, vector<128x27xbf16>
    %c0_1 = arith.constant 0 : index
    %c0_2 = arith.constant 0 : index
    %1 = vector.load %arg2[%c0_1, %c0_2] : memref<27x16xbf16, #tpu.memory_space<vmem>>, vector<27x16xbf16>
    %cst = arith.constant dense<0.000000e+00> : vector<128x16xf32>
    %2 = tpu.matmul %0, %1, %cst {dimension_numbers = #tpu.dot_dimension_numbers<[1], [0], [0], [1], [0, 0, 1, 1], [], []>} : vector<128x27xbf16>, vector<27x16xbf16>, vector<128x16xf32> -> vector<128x16xf32>
    %c0_3 = arith.constant 0 : index
    %c0_4 = arith.constant 0 : index
    %3 = vector.load %arg3[%c0_3, %c0_4] : memref<1x16xf32, #tpu.memory_space<vmem>>, vector<1x16xf32>
    %4 = vector.broadcast %3 : vector<1x16xf32> to vector<128x16xf32>
    %5 = arith.addf %2, %4 : vector<128x16xf32>
    %cst_5 = arith.constant 0.000000e+00 : f32
    %6 = vector.broadcast %cst_5 : f32 to vector<128x16xf32>
    %7 = arith.maximumf %5, %6 : vector<128x16xf32>
    %8 = arith.truncf %7 : vector<128x16xf32> to vector<128x16xbf16>
    %c0_6 = arith.constant 0 : index
    %c0_7 = arith.constant 0 : index
    %9 = vector.load %arg4[%c0_6, %c0_7] : memref<128x16xbf16, #tpu.memory_space<vmem>>, vector<128x16xbf16>
    tpu.vector_store %arg4[%c0_6, %c0_7], %8 {strides = array<i32>} : memref<128x16xbf16, #tpu.memory_space<vmem>>, vector<128x16xbf16>,
    return
  }
  func.func @transform_0(%arg0: i32) -> (i32, i32) {
    %c0_i32 = arith.constant 0 : i32
    %c0_i32_0 = arith.constant 0 : i32
    return %arg0, %c0_i32 : i32, i32
  }
  func.func @transform_1(%arg0: i32) -> (i32, i32) {
    %c0_i32 = arith.constant 0 : i32
    %c0_i32_0 = arith.constant 0 : i32
    %c0_i32_1 = arith.constant 0 : i32
    return %c0_i32, %c0_i32_0 : i32, i32
  }
  func.func @transform_2(%arg0: i32) -> (i32, i32) {
    %c0_i32 = arith.constant 0 : i32
    %c0_i32_0 = arith.constant 0 : i32
    %c0_i32_1 = arith.constant 0 : i32
    return %c0_i32, %c0_i32_0 : i32, i32
  }
  func.func @transform_3(%arg0: i32) -> (i32, i32) {
    %c0_i32 = arith.constant 0 : i32
    %c0_i32_0 = arith.constant 0 : i32
    return %arg0, %c0_i32 : i32, i32
  }
}

module attributes {stable_mosaic.version = 11 : i64} {
  func.func @_matmul_bias_act_kernel(%arg0: i32, %arg1: memref<32x144xbf16, #tpu.memory_space<vmem>>, %arg2: memref<144x32xbf16, #tpu.memory_space<vmem>>, %arg3: memref<1x32xf32, #tpu.memory_space<vmem>>, %arg4: memref<32x32xbf16, #tpu.memory_space<vmem>>) attributes {dimension_semantics = [#tpu.dimension_semantics<parallel>], iteration_bounds = array<i64: 1>, scalar_prefetch = 0 : i64, scratch_operands = 0 : i64, tpu.core_type = #tpu.core_type<tc>, window_params = [{transform_indices = @transform_0, window_bounds = array<i64: 32, 144>}, {pipeline_mode = #tpu.pipeline_mode<synchronous>, transform_indices = @transform_1, window_bounds = array<i64: 144, 32>}, {pipeline_mode = #tpu.pipeline_mode<synchronous>, transform_indices = @transform_2, window_bounds = array<i64: 1, 32>}, {transform_indices = @transform_3, window_bounds = array<i64: 32, 32>}]} {
    %c0 = arith.constant 0 : index
    %c0_0 = arith.constant 0 : index
    %0 = vector.load %arg1[%c0, %c0_0] : memref<32x144xbf16, #tpu.memory_space<vmem>>, vector<32x144xbf16>
    %c0_1 = arith.constant 0 : index
    %c0_2 = arith.constant 0 : index
    %1 = vector.load %arg2[%c0_1, %c0_2] : memref<144x32xbf16, #tpu.memory_space<vmem>>, vector<144x32xbf16>
    %cst = arith.constant dense<0.000000e+00> : vector<32x32xf32>
    %2 = tpu.matmul %0, %1, %cst {dimension_numbers = #tpu.dot_dimension_numbers<[1], [0], [0], [1], [0, 0, 1, 1], [], []>} : vector<32x144xbf16>, vector<144x32xbf16>, vector<32x32xf32> -> vector<32x32xf32>
    %c0_3 = arith.constant 0 : index
    %c0_4 = arith.constant 0 : index
    %3 = vector.load %arg3[%c0_3, %c0_4] : memref<1x32xf32, #tpu.memory_space<vmem>>, vector<1x32xf32>
    %4 = vector.broadcast %3 : vector<1x32xf32> to vector<32x32xf32>
    %5 = arith.addf %2, %4 : vector<32x32xf32>
    %cst_5 = arith.constant 0.000000e+00 : f32
    %6 = vector.broadcast %cst_5 : f32 to vector<32x32xf32>
    %7 = arith.maximumf %5, %6 : vector<32x32xf32>
    %8 = arith.truncf %7 : vector<32x32xf32> to vector<32x32xbf16>
    %c0_6 = arith.constant 0 : index
    %c0_7 = arith.constant 0 : index
    %9 = vector.load %arg4[%c0_6, %c0_7] : memref<32x32xbf16, #tpu.memory_space<vmem>>, vector<32x32xbf16>
    tpu.vector_store %arg4[%c0_6, %c0_7], %8 {strides = array<i32>} : memref<32x32xbf16, #tpu.memory_space<vmem>>, vector<32x32xbf16>,
    return
  }
  func.func @transform_0(%arg0: i32) -> (i32, i32) {
    %c0_i32 = arith.constant 0 : i32
    %c0_i32_0 = arith.constant 0 : i32
    return %arg0, %c0_i32 : i32, i32
  }
  func.func @transform_1(%arg0: i32) -> (i32, i32) {
    %c0_i32 = arith.constant 0 : i32
    %c0_i32_0 = arith.constant 0 : i32
    %c0_i32_1 = arith.constant 0 : i32
    return %c0_i32, %c0_i32_0 : i32, i32
  }
  func.func @transform_2(%arg0: i32) -> (i32, i32) {
    %c0_i32 = arith.constant 0 : i32
    %c0_i32_0 = arith.constant 0 : i32
    %c0_i32_1 = arith.constant 0 : i32
    return %c0_i32, %c0_i32_0 : i32, i32
  }
  func.func @transform_3(%arg0: i32) -> (i32, i32) {
    %c0_i32 = arith.constant 0 : i32
    %c0_i32_0 = arith.constant 0 : i32
    return %arg0, %c0_i32 : i32, i32
  }
}

module attributes {stable_mosaic.version = 11 : i64} {
  func.func @_matmul_bias_act_kernel(%arg0: i32, %arg1: memref<8x288xbf16, #tpu.memory_space<vmem>>, %arg2: memref<288x64xbf16, #tpu.memory_space<vmem>>, %arg3: memref<1x64xf32, #tpu.memory_space<vmem>>, %arg4: memref<8x64xbf16, #tpu.memory_space<vmem>>) attributes {dimension_semantics = [#tpu.dimension_semantics<parallel>], iteration_bounds = array<i64: 1>, scalar_prefetch = 0 : i64, scratch_operands = 0 : i64, tpu.core_type = #tpu.core_type<tc>, window_params = [{transform_indices = @transform_0, window_bounds = array<i64: 8, 288>}, {pipeline_mode = #tpu.pipeline_mode<synchronous>, transform_indices = @transform_1, window_bounds = array<i64: 288, 64>}, {pipeline_mode = #tpu.pipeline_mode<synchronous>, transform_indices = @transform_2, window_bounds = array<i64: 1, 64>}, {transform_indices = @transform_3, window_bounds = array<i64: 8, 64>}]} {
    %c0 = arith.constant 0 : index
    %c0_0 = arith.constant 0 : index
    %0 = vector.load %arg1[%c0, %c0_0] : memref<8x288xbf16, #tpu.memory_space<vmem>>, vector<8x288xbf16>
    %c0_1 = arith.constant 0 : index
    %c0_2 = arith.constant 0 : index
    %1 = vector.load %arg2[%c0_1, %c0_2] : memref<288x64xbf16, #tpu.memory_space<vmem>>, vector<288x64xbf16>
    %cst = arith.constant dense<0.000000e+00> : vector<8x64xf32>
    %2 = tpu.matmul %0, %1, %cst {dimension_numbers = #tpu.dot_dimension_numbers<[1], [0], [0], [1], [0, 0, 1, 1], [], []>} : vector<8x288xbf16>, vector<288x64xbf16>, vector<8x64xf32> -> vector<8x64xf32>
    %c0_3 = arith.constant 0 : index
    %c0_4 = arith.constant 0 : index
    %3 = vector.load %arg3[%c0_3, %c0_4] : memref<1x64xf32, #tpu.memory_space<vmem>>, vector<1x64xf32>
    %4 = vector.broadcast %3 : vector<1x64xf32> to vector<8x64xf32>
    %5 = arith.addf %2, %4 : vector<8x64xf32>
    %cst_5 = arith.constant 0.000000e+00 : f32
    %6 = vector.broadcast %cst_5 : f32 to vector<8x64xf32>
    %7 = arith.maximumf %5, %6 : vector<8x64xf32>
    %8 = arith.truncf %7 : vector<8x64xf32> to vector<8x64xbf16>
    %c0_6 = arith.constant 0 : index
    %c0_7 = arith.constant 0 : index
    %9 = vector.load %arg4[%c0_6, %c0_7] : memref<8x64xbf16, #tpu.memory_space<vmem>>, vector<8x64xbf16>
    tpu.vector_store %arg4[%c0_6, %c0_7], %8 {strides = array<i32>} : memref<8x64xbf16, #tpu.memory_space<vmem>>, vector<8x64xbf16>,
    return
  }
  func.func @transform_0(%arg0: i32) -> (i32, i32) {
    %c0_i32 = arith.constant 0 : i32
    %c0_i32_0 = arith.constant 0 : i32
    return %arg0, %c0_i32 : i32, i32
  }
  func.func @transform_1(%arg0: i32) -> (i32, i32) {
    %c0_i32 = arith.constant 0 : i32
    %c0_i32_0 = arith.constant 0 : i32
    %c0_i32_1 = arith.constant 0 : i32
    return %c0_i32, %c0_i32_0 : i32, i32
  }
  func.func @transform_2(%arg0: i32) -> (i32, i32) {
    %c0_i32 = arith.constant 0 : i32
    %c0_i32_0 = arith.constant 0 : i32
    %c0_i32_1 = arith.constant 0 : i32
    return %c0_i32, %c0_i32_0 : i32, i32
  }
  func.func @transform_3(%arg0: i32) -> (i32, i32) {
    %c0_i32 = arith.constant 0 : i32
    %c0_i32_0 = arith.constant 0 : i32
    return %arg0, %c0_i32 : i32, i32
  }
}

module attributes {stable_mosaic.version = 11 : i64} {
  func.func @_matmul_bias_act_kernel(%arg0: i32, %arg1: memref<8x576xbf16, #tpu.memory_space<vmem>>, %arg2: memref<576x64xbf16, #tpu.memory_space<vmem>>, %arg3: memref<1x64xf32, #tpu.memory_space<vmem>>, %arg4: memref<8x64xbf16, #tpu.memory_space<vmem>>) attributes {dimension_semantics = [#tpu.dimension_semantics<parallel>], iteration_bounds = array<i64: 1>, scalar_prefetch = 0 : i64, scratch_operands = 0 : i64, tpu.core_type = #tpu.core_type<tc>, window_params = [{transform_indices = @transform_0, window_bounds = array<i64: 8, 576>}, {pipeline_mode = #tpu.pipeline_mode<synchronous>, transform_indices = @transform_1, window_bounds = array<i64: 576, 64>}, {pipeline_mode = #tpu.pipeline_mode<synchronous>, transform_indices = @transform_2, window_bounds = array<i64: 1, 64>}, {transform_indices = @transform_3, window_bounds = array<i64: 8, 64>}]} {
    %c0 = arith.constant 0 : index
    %c0_0 = arith.constant 0 : index
    %0 = vector.load %arg1[%c0, %c0_0] : memref<8x576xbf16, #tpu.memory_space<vmem>>, vector<8x576xbf16>
    %c0_1 = arith.constant 0 : index
    %c0_2 = arith.constant 0 : index
    %1 = vector.load %arg2[%c0_1, %c0_2] : memref<576x64xbf16, #tpu.memory_space<vmem>>, vector<576x64xbf16>
    %cst = arith.constant dense<0.000000e+00> : vector<8x64xf32>
    %2 = tpu.matmul %0, %1, %cst {dimension_numbers = #tpu.dot_dimension_numbers<[1], [0], [0], [1], [0, 0, 1, 1], [], []>} : vector<8x576xbf16>, vector<576x64xbf16>, vector<8x64xf32> -> vector<8x64xf32>
    %c0_3 = arith.constant 0 : index
    %c0_4 = arith.constant 0 : index
    %3 = vector.load %arg3[%c0_3, %c0_4] : memref<1x64xf32, #tpu.memory_space<vmem>>, vector<1x64xf32>
    %4 = vector.broadcast %3 : vector<1x64xf32> to vector<8x64xf32>
    %5 = arith.addf %2, %4 : vector<8x64xf32>
    %cst_5 = arith.constant 0.000000e+00 : f32
    %6 = vector.broadcast %cst_5 : f32 to vector<8x64xf32>
    %7 = arith.maximumf %5, %6 : vector<8x64xf32>
    %8 = arith.truncf %7 : vector<8x64xf32> to vector<8x64xbf16>
    %c0_6 = arith.constant 0 : index
    %c0_7 = arith.constant 0 : index
    %9 = vector.load %arg4[%c0_6, %c0_7] : memref<8x64xbf16, #tpu.memory_space<vmem>>, vector<8x64xbf16>
    tpu.vector_store %arg4[%c0_6, %c0_7], %8 {strides = array<i32>} : memref<8x64xbf16, #tpu.memory_space<vmem>>, vector<8x64xbf16>,
    return
  }
  func.func @transform_0(%arg0: i32) -> (i32, i32) {
    %c0_i32 = arith.constant 0 : i32
    %c0_i32_0 = arith.constant 0 : i32
    return %arg0, %c0_i32 : i32, i32
  }
  func.func @transform_1(%arg0: i32) -> (i32, i32) {
    %c0_i32 = arith.constant 0 : i32
    %c0_i32_0 = arith.constant 0 : i32
    %c0_i32_1 = arith.constant 0 : i32
    return %c0_i32, %c0_i32_0 : i32, i32
  }
  func.func @transform_2(%arg0: i32) -> (i32, i32) {
    %c0_i32 = arith.constant 0 : i32
    %c0_i32_0 = arith.constant 0 : i32
    %c0_i32_1 = arith.constant 0 : i32
    return %c0_i32, %c0_i32_0 : i32, i32
  }
  func.func @transform_3(%arg0: i32) -> (i32, i32) {
    %c0_i32 = arith.constant 0 : i32
    %c0_i32_0 = arith.constant 0 : i32
    return %arg0, %c0_i32 : i32, i32
  }
}

module attributes {stable_mosaic.version = 11 : i64} {
  func.func @_matmul_bias_act_kernel(%arg0: i32, %arg1: memref<32x576xbf16, #tpu.memory_space<vmem>>, %arg2: memref<576x32xbf16, #tpu.memory_space<vmem>>, %arg3: memref<1x32xf32, #tpu.memory_space<vmem>>, %arg4: memref<32x32xbf16, #tpu.memory_space<vmem>>) attributes {dimension_semantics = [#tpu.dimension_semantics<parallel>], iteration_bounds = array<i64: 1>, scalar_prefetch = 0 : i64, scratch_operands = 0 : i64, tpu.core_type = #tpu.core_type<tc>, window_params = [{transform_indices = @transform_0, window_bounds = array<i64: 32, 576>}, {pipeline_mode = #tpu.pipeline_mode<synchronous>, transform_indices = @transform_1, window_bounds = array<i64: 576, 32>}, {pipeline_mode = #tpu.pipeline_mode<synchronous>, transform_indices = @transform_2, window_bounds = array<i64: 1, 32>}, {transform_indices = @transform_3, window_bounds = array<i64: 32, 32>}]} {
    %c0 = arith.constant 0 : index
    %c0_0 = arith.constant 0 : index
    %0 = vector.load %arg1[%c0, %c0_0] : memref<32x576xbf16, #tpu.memory_space<vmem>>, vector<32x576xbf16>
    %c0_1 = arith.constant 0 : index
    %c0_2 = arith.constant 0 : index
    %1 = vector.load %arg2[%c0_1, %c0_2] : memref<576x32xbf16, #tpu.memory_space<vmem>>, vector<576x32xbf16>
    %cst = arith.constant dense<0.000000e+00> : vector<32x32xf32>
    %2 = tpu.matmul %0, %1, %cst {dimension_numbers = #tpu.dot_dimension_numbers<[1], [0], [0], [1], [0, 0, 1, 1], [], []>} : vector<32x576xbf16>, vector<576x32xbf16>, vector<32x32xf32> -> vector<32x32xf32>
    %c0_3 = arith.constant 0 : index
    %c0_4 = arith.constant 0 : index
    %3 = vector.load %arg3[%c0_3, %c0_4] : memref<1x32xf32, #tpu.memory_space<vmem>>, vector<1x32xf32>
    %4 = vector.broadcast %3 : vector<1x32xf32> to vector<32x32xf32>
    %5 = arith.addf %2, %4 : vector<32x32xf32>
    %cst_5 = arith.constant 0.000000e+00 : f32
    %6 = vector.broadcast %cst_5 : f32 to vector<32x32xf32>
    %7 = arith.maximumf %5, %6 : vector<32x32xf32>
    %8 = arith.truncf %7 : vector<32x32xf32> to vector<32x32xbf16>
    %c0_6 = arith.constant 0 : index
    %c0_7 = arith.constant 0 : index
    %9 = vector.load %arg4[%c0_6, %c0_7] : memref<32x32xbf16, #tpu.memory_space<vmem>>, vector<32x32xbf16>
    tpu.vector_store %arg4[%c0_6, %c0_7], %8 {strides = array<i32>} : memref<32x32xbf16, #tpu.memory_space<vmem>>, vector<32x32xbf16>,
    return
  }
  func.func @transform_0(%arg0: i32) -> (i32, i32) {
    %c0_i32 = arith.constant 0 : i32
    %c0_i32_0 = arith.constant 0 : i32
    return %arg0, %c0_i32 : i32, i32
  }
  func.func @transform_1(%arg0: i32) -> (i32, i32) {
    %c0_i32 = arith.constant 0 : i32
    %c0_i32_0 = arith.constant 0 : i32
    %c0_i32_1 = arith.constant 0 : i32
    return %c0_i32, %c0_i32_0 : i32, i32
  }
  func.func @transform_2(%arg0: i32) -> (i32, i32) {
    %c0_i32 = arith.constant 0 : i32
    %c0_i32_0 = arith.constant 0 : i32
    %c0_i32_1 = arith.constant 0 : i32
    return %c0_i32, %c0_i32_0 : i32, i32
  }
  func.func @transform_3(%arg0: i32) -> (i32, i32) {
    %c0_i32 = arith.constant 0 : i32
    %c0_i32_0 = arith.constant 0 : i32
    return %arg0, %c0_i32 : i32, i32
  }
}

module attributes {stable_mosaic.version = 11 : i64} {
  func.func @_matmul_bias_act_kernel(%arg0: i32, %arg1: memref<128x288xbf16, #tpu.memory_space<vmem>>, %arg2: memref<288x5xbf16, #tpu.memory_space<vmem>>, %arg3: memref<1x5xf32, #tpu.memory_space<vmem>>, %arg4: memref<128x5xf32, #tpu.memory_space<vmem>>) attributes {dimension_semantics = [#tpu.dimension_semantics<parallel>], iteration_bounds = array<i64: 1>, scalar_prefetch = 0 : i64, scratch_operands = 0 : i64, tpu.core_type = #tpu.core_type<tc>, window_params = [{transform_indices = @transform_0, window_bounds = array<i64: 128, 288>}, {pipeline_mode = #tpu.pipeline_mode<synchronous>, transform_indices = @transform_1, window_bounds = array<i64: 288, 5>}, {pipeline_mode = #tpu.pipeline_mode<synchronous>, transform_indices = @transform_2, window_bounds = array<i64: 1, 5>}, {transform_indices = @transform_3, window_bounds = array<i64: 128, 5>}]} {
    %c0 = arith.constant 0 : index
    %c0_0 = arith.constant 0 : index
    %0 = vector.load %arg1[%c0, %c0_0] : memref<128x288xbf16, #tpu.memory_space<vmem>>, vector<128x288xbf16>
    %c0_1 = arith.constant 0 : index
    %c0_2 = arith.constant 0 : index
    %1 = vector.load %arg2[%c0_1, %c0_2] : memref<288x5xbf16, #tpu.memory_space<vmem>>, vector<288x5xbf16>
    %cst = arith.constant dense<0.000000e+00> : vector<128x5xf32>
    %2 = tpu.matmul %0, %1, %cst {dimension_numbers = #tpu.dot_dimension_numbers<[1], [0], [0], [1], [0, 0, 1, 1], [], []>} : vector<128x288xbf16>, vector<288x5xbf16>, vector<128x5xf32> -> vector<128x5xf32>
    %c0_3 = arith.constant 0 : index
    %c0_4 = arith.constant 0 : index
    %3 = vector.load %arg3[%c0_3, %c0_4] : memref<1x5xf32, #tpu.memory_space<vmem>>, vector<1x5xf32>
    %4 = vector.broadcast %3 : vector<1x5xf32> to vector<128x5xf32>
    %5 = arith.addf %2, %4 : vector<128x5xf32>
    %c0_5 = arith.constant 0 : index
    %c0_6 = arith.constant 0 : index
    %6 = vector.load %arg4[%c0_5, %c0_6] : memref<128x5xf32, #tpu.memory_space<vmem>>, vector<128x5xf32>
    tpu.vector_store %arg4[%c0_5, %c0_6], %5 {strides = array<i32>} : memref<128x5xf32, #tpu.memory_space<vmem>>, vector<128x5xf32>,
    return
  }
  func.func @transform_0(%arg0: i32) -> (i32, i32) {
    %c0_i32 = arith.constant 0 : i32
    %c0_i32_0 = arith.constant 0 : i32
    return %arg0, %c0_i32 : i32, i32
  }
  func.func @transform_1(%arg0: i32) -> (i32, i32) {
    %c0_i32 = arith.constant 0 : i32
    %c0_i32_0 = arith.constant 0 : i32
    %c0_i32_1 = arith.constant 0 : i32
    return %c0_i32, %c0_i32_0 : i32, i32
  }
  func.func @transform_2(%arg0: i32) -> (i32, i32) {
    %c0_i32 = arith.constant 0 : i32
    %c0_i32_0 = arith.constant 0 : i32
    %c0_i32_1 = arith.constant 0 : i32
    return %c0_i32, %c0_i32_0 : i32, i32
  }
  func.func @transform_3(%arg0: i32) -> (i32, i32) {
    %c0_i32 = arith.constant 0 : i32
    %c0_i32_0 = arith.constant 0 : i32
    return %arg0, %c0_i32 : i32, i32
  }
}

module attributes {stable_mosaic.version = 11 : i64} {
  func.func @_head_kernel(%arg0: i32, %arg1: i32, %arg2: memref<1x2x8x8xf32, #tpu.memory_space<vmem>>, %arg3: memref<1x3x8x8xf32, #tpu.memory_space<vmem>>, %arg4: memref<1x1x8x8xi32, #tpu.memory_space<vmem>>, %arg5: memref<1x3x8x8xf32, #tpu.memory_space<vmem>>) attributes {dimension_semantics = [#tpu.dimension_semantics<parallel>, #tpu.dimension_semantics<parallel>], iteration_bounds = array<i64: 2, 1>, scalar_prefetch = 0 : i64, scratch_operands = 0 : i64, tpu.core_type = #tpu.core_type<tc>, window_params = [{transform_indices = @transform_0, window_bounds = array<i64: 1, 2, 8, 8>}, {transform_indices = @transform_1, window_bounds = array<i64: 1, 3, 8, 8>}, {transform_indices = @transform_2, window_bounds = array<i64: 1, 1, 8, 8>}, {transform_indices = @transform_3, window_bounds = array<i64: 1, 3, 8, 8>}]} {
    %c0 = arith.constant 0 : index
    %c0_0 = arith.constant 0 : index
    %c0_1 = arith.constant 0 : index
    %c0_2 = arith.constant 0 : index
    %0 = vector.load %arg2[%c0, %c0_0, %c0_1, %c0_2] : memref<1x2x8x8xf32, #tpu.memory_space<vmem>>, vector<1x2x8x8xf32>
    %1 = vector.extract_strided_slice %0 {offsets = [0, 1, 0, 0], sizes = [1, 1, 8, 8], strides = [1, 1, 1, 1]} : vector<1x2x8x8xf32> to vector<1x1x8x8xf32>
    %2 = vector.extract_strided_slice %0 {offsets = [0, 0, 0, 0], sizes = [1, 1, 8, 8], strides = [1, 1, 1, 1]} : vector<1x2x8x8xf32> to vector<1x1x8x8xf32>
    %3 = arith.cmpf ogt, %1, %2 : vector<1x1x8x8xf32>
    %c1_i32 = arith.constant 1 : i32
    %c0_i32 = arith.constant 0 : i32
    %4 = vector.broadcast %c1_i32 : i32 to vector<1x1x8x8xi32>
    %5 = vector.broadcast %c0_i32 : i32 to vector<1x1x8x8xi32>
    %6 = arith.select %3, %4, %5 : vector<1x1x8x8xi1>, vector<1x1x8x8xi32>
    %c0_3 = arith.constant 0 : index
    %c0_4 = arith.constant 0 : index
    %c0_5 = arith.constant 0 : index
    %c0_6 = arith.constant 0 : index
    %7 = vector.load %arg4[%c0_3, %c0_4, %c0_5, %c0_6] : memref<1x1x8x8xi32, #tpu.memory_space<vmem>>, vector<1x1x8x8xi32>
    tpu.vector_store %arg4[%c0_3, %c0_4, %c0_5, %c0_6], %6 {strides = array<i32>} : memref<1x1x8x8xi32, #tpu.memory_space<vmem>>, vector<1x1x8x8xi32>,
    %c0_7 = arith.constant 0 : index
    %c0_8 = arith.constant 0 : index
    %c0_9 = arith.constant 0 : index
    %c0_10 = arith.constant 0 : index
    %8 = vector.load %arg3[%c0_7, %c0_8, %c0_9, %c0_10] : memref<1x3x8x8xf32, #tpu.memory_space<vmem>>, vector<1x3x8x8xf32>
    %cst = arith.constant 0.000000e+00 : f32
    %9 = vector.broadcast %cst : f32 to vector<1x3x8x8xf32>
    %10 = arith.subf %9, %8 : vector<1x3x8x8xf32>
    %11 = math.exp %10 : vector<1x3x8x8xf32>
    %cst_11 = arith.constant 1.000000e+00 : f32
    %12 = vector.broadcast %cst_11 : f32 to vector<1x3x8x8xf32>
    %13 = arith.addf %12, %11 : vector<1x3x8x8xf32>
    %cst_12 = arith.constant 1.000000e+00 : f32
    %14 = vector.broadcast %cst_12 : f32 to vector<1x3x8x8xf32>
    %15 = arith.divf %14, %13 : vector<1x3x8x8xf32>
    %c0_13 = arith.constant 0 : index
    %c0_14 = arith.constant 0 : index
    %c0_15 = arith.constant 0 : index
    %c0_16 = arith.constant 0 : index
    %16 = vector.load %arg5[%c0_13, %c0_14, %c0_15, %c0_16] : memref<1x3x8x8xf32, #tpu.memory_space<vmem>>, vector<1x3x8x8xf32>
    tpu.vector_store %arg5[%c0_13, %c0_14, %c0_15, %c0_16], %15 {strides = array<i32>} : memref<1x3x8x8xf32, #tpu.memory_space<vmem>>, vector<1x3x8x8xf32>,
    return
  }
  func.func @transform_0(%arg0: i32, %arg1: i32) -> (i32, i32, i32, i32) {
    %c0_i32 = arith.constant 0 : i32
    %c0_i32_0 = arith.constant 0 : i32
    %c0_i32_1 = arith.constant 0 : i32
    return %arg0, %c0_i32, %arg1, %c0_i32_0 : i32, i32, i32, i32
  }
  func.func @transform_1(%arg0: i32, %arg1: i32) -> (i32, i32, i32, i32) {
    %c0_i32 = arith.constant 0 : i32
    %c0_i32_0 = arith.constant 0 : i32
    %c0_i32_1 = arith.constant 0 : i32
    return %arg0, %c0_i32, %arg1, %c0_i32_0 : i32, i32, i32, i32
  }
  func.func @transform_2(%arg0: i32, %arg1: i32) -> (i32, i32, i32, i32) {
    %c0_i32 = arith.constant 0 : i32
    %c0_i32_0 = arith.constant 0 : i32
    %c0_i32_1 = arith.constant 0 : i32
    return %arg0, %c0_i32, %arg1, %c0_i32_0 : i32, i32, i32, i32
  }
  func.func @transform_3(%arg0: i32, %arg1: i32) -> (i32, i32, i32, i32) {
    %c0_i32 = arith.constant 0 : i32
    %c0_i32_0 = arith.constant 0 : i32
    %c0_i32_1 = arith.constant 0 : i32
    return %arg0, %c0_i32, %arg1, %c0_i32_0 : i32, i32, i32, i32
  }
}

</mosaic_0001>

<bundles_post_ra>
// kernel: lanenet_forward.7
= control target key start
LH: loop header
LB: loop body
LE: loop exit
PB: predicated region body
PF: predicated region fallthrough
CT: control target
= control target key end

     0   :  { %vm118_vm0 = vcmask 1044480   ;;  %vm119_vm1 = vcmask 1045504   ;;  %vm93_vm2 = vcmask 220160   ;;  %v419_v1 = vmov 65535   ;;  %s545_s1 = inlined_call_operand.vmem [shape: bf16[27,16], index: 1, kind: input, shape index: {}]   ;;  %s546_s0 = inlined_call_operand.vmem [shape: bf16[128,27], index: 0, kind: input, shape index: {}]   ;;  %s547_s2 = inlined_call_operand.vmem [shape: f32[1,16], index: 2, kind: input, shape index: {}]   ;;  %s548_s3 = inlined_call_operand.vmem [shape: bf16[128,16], index: 3, kind: output, shape index: {}]  }
   0x1   :  { %v409_v0 = vld [vmem:[%s545_s1] sm:$0xff]   ;;  %v120_v2 = vsel %vm118_vm0, 4294967295, %v419_v1  ;;  %v410_v3 = vld [vmem:[%s545_s1 + $0x8] sm:$0x3f]   ;;  %v415_v10 = vld [vmem:[%s546_s0 + $0x10] sm:$0xff]   ;;  %vm302_vm3 = vcmask 125952  }
   0x2   :  { %384 = vmatprep.subr.bf16.mxu0 %v409_v0  ;;  %404 = vmatprep.subr.bf16.mxu1 %v409_v0  ;;  %v121_v4 = vsel %vm119_vm1, %v120_v2, 0  ;;  %v411_v5 = vld [vmem:[%s546_s0] sm:$0xff]   ;;  %v413_v8 = vld [vmem:[%s546_s0 + $0x8] sm:$0xff]   ;;  %v416_v11 = vld [vmem:[%s546_s0 + $0x30] sm:$0xff]  }
   0x3   :  { %385 = vmatpush3.bf16.msra.mxu0 %v409_v0  ;;  %406 = vmatpush3.bf16.msra.mxu1 %v409_v0  ;;  %v123_v6 = vand.u32 %v410_v3, %v121_v4  ;;  %v412_v7 = vld [vmem:[%s546_s0 + $0x20] sm:$0xff]   ;;  %v414_v9 = vld [vmem:[%s546_s0 + $0x28] sm:$0xff]   ;;  %v417_v12 = vld [vmem:[%s546_s0 + $0x18] sm:$0xff]  }
   0x4   :  { %388 = vmatprep.mubr.msk.bf16.mxu0 %vm93_vm2, %v411_v5  ;;  %396 = vmatprep.mubr.msk.bf16.mxu1 %vm93_vm2, %v412_v7  ;;  %v418_v13 = vld [vmem:[%s546_s0 + $0x38] sm:$0xff]   ;;  %v323_v14 = vld [vmem:[%s547_s2] ss:$0 sm:$0xff] }
   0x5   :  { %386 = vmatprep.subr.bf16.mxu0 %v123_v6  ;;  %405 = vmatprep.subr.bf16.mxu1 %v123_v6 }
   0x7   :  { %387 = vmatpush3.bf16.msra.mxu0 %v123_v6  ;;  %407 = vmatpush3.bf16.msra.mxu1 %v123_v6 }
   0xa   :  { %389 = vmatmul.mubr.msk.bf16.vlgmr.msra.gmra.mrb[0].mxu0 %vm93_vm2, %v413_v8  ;;  %397 = vmatmul.mubr.msk.bf16.vlgmr.msra.gmra.mrb[0].mxu1 %vm93_vm2, %v414_v9 }
   0xb   :  { %392 = vmatprep.mubr.msk.bf16.mxu0 %vm93_vm2, %v415_v10  ;;  %400 = vmatprep.mubr.msk.bf16.mxu1 %vm93_vm2, %v416_v11 }
  0x12   :  { %393 = vmatmul.mubr.msk.bf16.gmra.mrb[4].mxu0 %vm93_vm2, %v417_v12  ;;  %401 = vmatmul.mubr.msk.bf16.gmra.mrb[4].mxu1 %vm93_vm2, %v418_v13 }
  0xdd   :  { %v390_v15 = vpop.f32.mrb[0].mxu0  ;;  %v398_v16 = vpop.f32.mrb[0].mxu1 }
  0xde   :  { %v168_v17 = vadd.f32 %v390_v15, %v323_v14  ;;  %v200_v18 = vadd.f32 %v398_v16, %v323_v14  ;;  %v159_v19 = vpop.f32.mrb[1].mxu0  ;;  %v191_v20 = vpop.f32.mrb[1].mxu1 }
  0xdf   :  { %v160_v21 = vadd.f32 %v323_v14, %v159_v19  ;;  %v192_v22 = vadd.f32 %v323_v14, %v191_v20  ;;  %v391_v23 = vpop.f32.mrb[2].mxu0  ;;  %v399_v24 = vpop.f32.mrb[2].mxu1 }
  0xe0   :  { %v224_v25 = vmax.f32 %v168_v17, 0.0  ;;  %v232_v26 = vmax.f32 %v200_v18, 0.0  ;;  %v171_v27 = vadd.f32 %v391_v23, %v323_v14  ;;  %v203_v28 = vadd.f32 %v399_v24, %v323_v14  ;;  %v162_v29 = vpop.f32.mrb[3].mxu0  ;;  %v194_v30 = vpop.f32.mrb[3].mxu1 }
  0xe1   :  { %v222_v31 = vmax.f32 %v160_v21, 0.0  ;;  %v230_v32 = vmax.f32 %v192_v22, 0.0  ;;  %v163_v33 = vadd.f32 %v323_v14, %v162_v29  ;;  %v195_v34 = vadd.f32 %v323_v14, %v194_v30 }
  0xe2   :  { %v360_v35 = vpack.c.bf16 %v224_v25, %v224_v25  ;;  %v368_v36 = vpack.c.bf16 %v232_v26, %v232_v26  ;;  %v225_v37 = vmax.f32 %v171_v27, 0.0  ;;  %v233_v38 = vmax.f32 %v203_v28, 0.0 }
  0xe3   :  { %v358_v39 = vpack.c.bf16 %v222_v31, %v222_v31  ;;  %v366_v40 = vpack.c.bf16 %v230_v32, %v230_v32  ;;  %v223_v41 = vmax.f32 %v163_v33, 0.0  ;;  %v231_v42 = vmax.f32 %v195_v34, 0.0 }
  0xe4   :  { %305 = vst.msk [vmem:[%s548_s3 + $0x8] sm:$0xf] %vm302_vm3, %v360_v35  ;;  %313 = vst.msk [vmem:[%s548_s3 + $0x28] sm:$0xf] %vm302_vm3, %v368_v36  ;;  %v361_v43 = vpack.c.bf16 %v225_v37, %v225_v37  ;;  %v369_v44 = vpack.c.bf16 %v233_v38, %v233_v38 }
  0xe5   :  { %303 = vst.msk [vmem:[%s548_s3] sm:$0xf] %vm302_vm3, %v358_v39  ;;  %311 = vst.msk [vmem:[%s548_s3 + $0x20] sm:$0xf] %vm302_vm3, %v366_v40  ;;  %v359_v45 = vpack.c.bf16 %v223_v41, %v223_v41  ;;  %v367_v46 = vpack.c.bf16 %v231_v42, %v231_v42  ;;  %v394_v47 = vpop.f32.mrb[4].mxu0  ;;  %v402_v48 = vpop.f32.mrb[4].mxu1 }
  0xe6   :  { %306 = vst.msk [vmem:[%s548_s3 + $0xc] sm:$0xf] %vm302_vm3, %v361_v43  ;;  %314 = vst.msk [vmem:[%s548_s3 + $0x2c] sm:$0xf] %vm302_vm3, %v369_v44  ;;  %v184_v49 = vadd.f32 %v394_v47, %v323_v14  ;;  %v216_v50 = vadd.f32 %v402_v48, %v323_v14  ;;  %v175_v51 = vpop.f32.mrb[5].mxu0  ;;  %v207_v52 = vpop.f32.mrb[5].mxu1 }
  0xe7   :  { %304 = vst.msk [vmem:[%s548_s3 + $0x4] sm:$0xf] %vm302_vm3, %v359_v45  ;;  %312 = vst.msk [vmem:[%s548_s3 + $0x24] sm:$0xf] %vm302_vm3, %v367_v46  ;;  %v176_v53 = vadd.f32 %v323_v14, %v175_v51  ;;  %v208_v54 = vadd.f32 %v323_v14, %v207_v52  ;;  %v395_v55 = vpop.f32.mrb[6].mxu0  ;;  %v403_v56 = vpop.f32.mrb[6].mxu1 }
  0xe8   :  { %v228_v57 = vmax.f32 %v184_v49, 0.0  ;;  %v236_v58 = vmax.f32 %v216_v50, 0.0  ;;  %v187_v59 = vadd.f32 %v395_v55, %v323_v14  ;;  %v219_v60 = vadd.f32 %v403_v56, %v323_v14  ;;  %v178_v61 = vpop.f32.mrb[7].mxu0  ;;  %v210_v62 = vpop.f32.mrb[7].mxu1 }
  0xe9   :  { %v226_v63 = vmax.f32 %v176_v53, 0.0  ;;  %v234_v0 = vmax.f32 %v208_v54, 0.0  ;;  %v179_v1 = vadd.f32 %v323_v14, %v178_v61  ;;  %v211_v2 = vadd.f32 %v323_v14, %v210_v62 }
  0xea   :  { %v364_v3 = vpack.c.bf16 %v228_v57, %v228_v57  ;;  %v372_v4 = vpack.c.bf16 %v236_v58, %v236_v58  ;;  %v229_v5 = vmax.f32 %v187_v59, 0.0  ;;  %v237_v6 = vmax.f32 %v219_v60, 0.0 }
  0xeb   :  { %v362_v7 = vpack.c.bf16 %v226_v63, %v226_v63  ;;  %v370_v8 = vpack.c.bf16 %v234_v0, %v234_v0  ;;  %v227_v9 = vmax.f32 %v179_v1, 0.0  ;;  %v235_v10 = vmax.f32 %v211_v2, 0.0 }
  0xec   :  { %309 = vst.msk [vmem:[%s548_s3 + $0x18] sm:$0xf] %vm302_vm3, %v364_v3  ;;  %317 = vst.msk [vmem:[%s548_s3 + $0x38] sm:$0xf] %vm302_vm3, %v372_v4  ;;  %v365_v11 = vpack.c.bf16 %v229_v5, %v229_v5  ;;  %v373_v12 = vpack.c.bf16 %v237_v6, %v237_v6 }
  0xed   :  { %307 = vst.msk [vmem:[%s548_s3 + $0x10] sm:$0xf] %vm302_vm3, %v362_v7  ;;  %315 = vst.msk [vmem:[%s548_s3 + $0x30] sm:$0xf] %vm302_vm3, %v370_v8  ;;  %v363_v13 = vpack.c.bf16 %v227_v9, %v227_v9  ;;  %v371_v14 = vpack.c.bf16 %v235_v10, %v235_v10 }
  0xee   :  { %310 = vst.msk [vmem:[%s548_s3 + $0x1c] sm:$0xf] %vm302_vm3, %v365_v11  ;;  %318 = vst.msk [vmem:[%s548_s3 + $0x3c] sm:$0xf] %vm302_vm3, %v373_v12 }
  0xef   :  { %308 = vst.msk [vmem:[%s548_s3 + $0x14] sm:$0xf] %vm302_vm3, %v363_v13  ;;  %316 = vst.msk [vmem:[%s548_s3 + $0x34] sm:$0xf] %vm302_vm3, %v371_v14 }

// kernel: lanenet_forward.8
= control target key start
LH: loop header
LB: loop body
LE: loop exit
PB: predicated region body
PF: predicated region fallthrough
CT: control target
= control target key end

     0   :  { %v259_v0 = vmov 0   ;;  %vm116_vm0 = vcmask 130048   ;;  %vm192_vm1 = vcmask 257024   ;;  %s334_s1 = inlined_call_operand.vmem [shape: bf16[144,32], index: 1, kind: input, shape index: {}]   ;;  %s335_s0 = inlined_call_operand.vmem [shape: bf16[32,144], index: 0, kind: input, shape index: {}]   ;;  %s336_s2 = inlined_call_operand.vmem [shape: f32[1,32], index: 2, kind: input, shape index: {}]   ;;  %s337_s3 = inlined_call_operand.vmem [shape: bf16[32,32], index: 3, kind: output, shape index: {}]  }
   0x1   :  { %123 = vmatprep.subr.bf16.mxu0 %v259_v0  ;;  %225 = vmatprep.subr.bf16.mxu1 %v259_v0  ;;  %v244_v1 = vld [vmem:[%s334_s1] sm:$0xff]   ;;  %v245_v2 = vld [vmem:[%s334_s1 + $0x8] sm:$0xff]   ;;  %v246_v3 = vld [vmem:[%s334_s1 + $0x10] sm:$0xff]  }
   0x2   :  { %124 = vmatpush1.bf16.msra.mxu0 %v244_v1  ;;  %234 = vmatpush1.bf16.msra.mxu1 %v244_v1  ;;  %v247_v4 = vld [vmem:[%s334_s1 + $0x18] sm:$0xff]   ;;  %v255_v5 = vld [vmem:[%s335_s0 + $0x4] ss:$8 sps:$4 sm:$0xff]   ;;  %v250_v9 = vld [vmem:[%s334_s1 + $0x30] sm:$0xff]  }
   0x3   :  { %125 = vmatprep.subr.bf16.mxu0 %v259_v0  ;;  %226 = vmatprep.subr.bf16.mxu1 %v259_v0  ;;  %v258_v6 = vld [vmem:[%s335_s0 + $0x14] ss:$8 sps:$4 sm:$0xff]   ;;  %v248_v7 = vld [vmem:[%s334_s1 + $0x20] sm:$0xff]   ;;  %v249_v8 = vld [vmem:[%s334_s1 + $0x28] sm:$0xff]  }
   0x4   :  { %215 = vmatprep.mubr.msk.bf16.mxu0 %vm116_vm0, %v255_v5  ;;  %216 = vmatprep.mubr.msk.bf16.mxu1 %vm116_vm0, %v258_v6  ;;  %v251_v10 = vld [vmem:[%s334_s1 + $0x38] sm:$0xff]   ;;  %v252_v11 = vld [vmem:[%s334_s1 + $0x40] sm:$0xff]  }
   0x5   :  { %v253_v12 = vld [vmem:[%s335_s0] ss:$8 sps:$4 sm:$0xff]   ;;  %v256_v13 = vld [vmem:[%s335_s0 + $0x10] ss:$8 sps:$4 sm:$0xff]  }
   0x6   :  { %126 = vmatpush1.bf16.msra.mxu0 %v245_v2  ;;  %235 = vmatpush1.bf16.msra.mxu1 %v245_v2  ;;  %v201_v14 = vld [vmem:[%s336_s2] ss:$0 sm:$0xff] }
   0x7   :  { %127 = vmatprep.subr.bf16.mxu0 %v259_v0  ;;  %227 = vmatprep.subr.bf16.mxu1 %v259_v0 }
   0xa   :  { %128 = vmatpush1.bf16.msra.mxu0 %v246_v3  ;;  %236 = vmatpush1.bf16.msra.mxu1 %v246_v3 }
   0xb   :  { %129 = vmatprep.subr.bf16.mxu0 %v259_v0  ;;  %228 = vmatprep.subr.bf16.mxu1 %v259_v0 }
   0xe   :  { %130 = vmatpush1.bf16.msra.mxu0 %v247_v4  ;;  %237 = vmatpush1.bf16.msra.mxu1 %v247_v4 }
   0xf   :  { %131 = vmatprep.subr.bf16.mxu0 %v259_v0  ;;  %229 = vmatprep.subr.bf16.mxu1 %v259_v0 }
  0x12   :  { %132 = vmatpush1.bf16.msra.mxu0 %v248_v7  ;;  %238 = vmatpush1.bf16.msra.mxu1 %v248_v7 }
  0x13   :  { %133 = vmatprep.subr.bf16.mxu0 %v259_v0  ;;  %230 = vmatprep.subr.bf16.mxu1 %v259_v0 }
  0x16   :  { %134 = vmatpush1.bf16.msra.mxu0 %v249_v8  ;;  %239 = vmatpush1.bf16.msra.mxu1 %v249_v8 }
  0x17   :  { %135 = vmatprep.subr.bf16.mxu0 %v259_v0  ;;  %231 = vmatprep.subr.bf16.mxu1 %v259_v0 }
  0x1a   :  { %136 = vmatpush1.bf16.msra.mxu0 %v250_v9  ;;  %240 = vmatpush1.bf16.msra.mxu1 %v250_v9 }
  0x1b   :  { %137 = vmatprep.subr.bf16.mxu0 %v259_v0  ;;  %232 = vmatprep.subr.bf16.mxu1 %v259_v0 }
  0x1e   :  { %138 = vmatpush1.bf16.msra.mxu0 %v251_v10  ;;  %241 = vmatpush1.bf16.msra.mxu1 %v251_v10 }
  0x1f   :  { %139 = vmatprep.subr.bf16.mxu0 %v259_v0  ;;  %233 = vmatprep.subr.bf16.mxu1 %v259_v0 }
  0x22   :  { %140 = vmatpush1.bf16.msra.mxu0 %v252_v11  ;;  %242 = vmatpush1.bf16.msra.mxu1 %v252_v11 }
  0x25   :  { %156 = vmatmul.mubr.bf16.vlgmr.msra.gmra.mrb[0].mxu0 %v253_v12  ;;  %164 = vmatmul.mubr.bf16.vlgmr.msra.gmra.mrb[0].mxu1 %v256_v13 }
  0xf8   :  { %v157_v15 = vpop.f32.mrb[0].mxu0  ;;  %v165_v16 = vpop.f32.mrb[0].mxu1 }
  0xf9   :  { %v158_v17 = vadd.f32 %v201_v14, %v157_v15  ;;  %v166_v18 = vadd.f32 %v201_v14, %v165_v16  ;;  %v159_v19 = vpop.f32.mrb[1].mxu0  ;;  %v167_v20 = vpop.f32.mrb[1].mxu1 }
  0xfa   :  { %v160_v21 = vpop.f32.mrb[2].mxu0  ;;  %v168_v22 = vpop.f32.mrb[2].mxu1 }
  0xfb   :  { %v172_v23 = vmax.f32 %v158_v17, 0.0  ;;  %v174_v24 = vmax.f32 %v166_v18, 0.0  ;;  %v161_v25 = vadd.f32 %v201_v14, %v160_v21  ;;  %v169_v26 = vadd.f32 %v201_v14, %v168_v22  ;;  %v162_v27 = vpop.f32.mrb[3].mxu0  ;;  %v170_v28 = vpop.f32.mrb[3].mxu1 }
  0xfd   :  { %v221_v29 = vpack.c.bf16 %v172_v23, %v172_v23  ;;  %v223_v30 = vpack.c.bf16 %v174_v24, %v174_v24  ;;  %v173_v31 = vmax.f32 %v161_v25, 0.0  ;;  %v175_v32 = vmax.f32 %v169_v26, 0.0 }
  0xff   :  { %193 = vst.msk [vmem:[%s337_s3] sm:$0xf] %vm192_vm1, %v221_v29  ;;  %195 = vst.msk [vmem:[%s337_s3 + $0x8] sm:$0xf] %vm192_vm1, %v223_v30  ;;  %v222_v33 = vpack.c.bf16 %v173_v31, %v173_v31  ;;  %v224_v34 = vpack.c.bf16 %v175_v32, %v175_v32 }
 0x101   :  { %194 = vst.msk [vmem:[%s337_s3 + $0x4] sm:$0xf] %vm192_vm1, %v222_v33  ;;  %196 = vst.msk [vmem:[%s337_s3 + $0xc] sm:$0xf] %vm192_vm1, %v224_v34 }

// kernel: lanenet_forward.9
= control target key start
LH: loop header
LB: loop body
LE: loop exit
PB: predicated region body
PF: predicated region fallthrough
CT: control target
= control target key end

     0   :  { %v349_v1 = vmov 0.0   ;;  %vm350_vm0 = vmmov 0   ;;  %vm178_vm1 = vcmask 261120   ;;  %vm264_vm2 = vcmask 519168   ;;  %s437_s1 = inlined_call_operand.vmem [shape: bf16[288,64], index: 1, kind: input, shape index: {}]   ;;  %s438_s0 = inlined_call_operand.vmem [shape: bf16[8,288], index: 0, kind: input, shape index: {}]   ;;  %s439_s2 = inlined_call_operand.vmem [shape: f32[1,64], index: 2, kind: input, shape index: {}]   ;;  %s440_s3 = inlined_call_operand.vmem [shape: bf16[8,64], index: 3, kind: output, shape index: {}]  }
   0x1   :  { %v328_v0 = vld [vmem:[%s437_s1 + $0x40] sm:$0xff]   ;;  %318 = vmatprep.subr.bf16.mxu1 %v349_v1  ;;  %322 = vmatprep.mubr.msk.bf16.mxu1 %vm350_vm0, %v349_v1  ;;  %v330_v3 = vld [vmem:[%s437_s1 + $0x48] sm:$0xff]   ;;  %v332_v5 = vld [vmem:[%s437_s1 + $0x50] sm:$0xff]  }
   0x2   :  { %v329_v2 = vld [vmem:[%s437_s1] sm:$0xff]   ;;  %293 = vmatprep.subr.bf16.mxu0 %v328_v0  ;;  %v331_v4 = vld [vmem:[%s437_s1 + $0x8] sm:$0xff]   ;;  %v333_v6 = vld [vmem:[%s437_s1 + $0x10] sm:$0xff]  }
   0x3   :  { %294 = vmatpush3.bf16.msra.mxu0 %v329_v2  ;;  %v334_v7 = vld [vmem:[%s437_s1 + $0x58] sm:$0xff]   ;;  %v336_v9 = vld [vmem:[%s437_s1 + $0x60] sm:$0xff]   ;;  %v338_v12 = vld [vmem:[%s437_s1 + $0x68] sm:$0xff]  }
   0x4   :  { %295 = vmatprep.subr.bf16.mxu0 %v330_v3  ;;  %v335_v8 = vld [vmem:[%s437_s1 + $0x18] sm:$0xff]   ;;  %v342_v10 = vld [vmem:[%s437_s1 + $0x80] sm:$0xff]   ;;  %v348_v15 = vld [vmem:[%s437_s1 + $0x88] sm:$0xff]  }
   0x5   :  { %v337_v11 = vld [vmem:[%s437_s1 + $0x20] sm:$0xff]   ;;  %319 = vmatpush3.bf16.msra.mxu1 %v342_v10  ;;  %v339_v16 = vld [vmem:[%s437_s1 + $0x28] sm:$0xff]   ;;  %v340_v17 = vld [vmem:[%s437_s1 + $0x70] sm:$0xff]  }
   0x6   :  { %320 = vmatprep.subr.bf16.mxu1 %v349_v1  ;;  %v15_v13 = vld [vmem:[%s438_s0] sm:$0xff]  ;;  %v347_v18 = vld [vmem:[%s438_s0 + $0x8] ss:$0 sps:$4 sm:$0xff]   ;;  %v341_v19 = vld [vmem:[%s437_s1 + $0x30] sm:$0xff]  }
   0x7   :  { %296 = vmatpush3.bf16.msra.mxu0 %v331_v4  ;;  %v272_v14 = vcombine.high %v15_v13, %v15_v13  ;;  %v343_v20 = vld [vmem:[%s437_s1 + $0x78] sm:$0xff]   ;;  %v271_v22 = vcombine.low %v15_v13, %v15_v13  ;;  %v270_v29 = vld [vmem:[%s439_s2] ss:$0 sm:$0xff] }
   0x8   :  { %297 = vmatprep.subr.bf16.mxu0 %v332_v5  ;;  %v344_v21 = vld [vmem:[%s437_s1 + $0x38] sm:$0xff]  }
   0x9   :  { %214 = vmatprep.mubr.bf16.mxu0 %v272_v14  ;;  %321 = vmatpush3.bf16.msra.mxu1 %v348_v15 }
   0xb   :  { %298 = vmatpush3.bf16.msra.mxu0 %v333_v6 }
   0xc   :  { %299 = vmatprep.subr.bf16.mxu0 %v334_v7  ;;  %323 = vmatmul.mubr.msk.bf16.vlgmr.msra.gmra.mrb[0].mxu1 %vm178_vm1, %v347_v18 }
   0xf   :  { %300 = vmatpush3.bf16.msra.mxu0 %v335_v8 }
  0x10   :  { %301 = vmatprep.subr.bf16.mxu0 %v336_v9 }
  0x13   :  { %302 = vmatpush3.bf16.msra.mxu0 %v337_v11 }
  0x14   :  { %303 = vmatprep.subr.bf16.mxu0 %v338_v12 }
  0x17   :  { %304 = vmatpush3.bf16.msra.mxu0 %v339_v16 }
  0x18   :  { %305 = vmatprep.subr.bf16.mxu0 %v340_v17 }
  0x1b   :  { %306 = vmatpush3.bf16.msra.mxu0 %v341_v19 }
  0x1c   :  { %307 = vmatprep.subr.bf16.mxu0 %v343_v20 }
  0x1f   :  { %308 = vmatpush3.bf16.msra.mxu0 %v344_v21 }
  0x22   :  { %215 = vmatmul.mubr.bf16.vlgmr.msra.gmra.mrb[0].mxu0 %v271_v22 }
  0xdf   :  { %v256_v23 = vpop.f32.mrb[0].mxu1 }
  0xe0   :  { %v324_v24 = vpop.f32.mrb[1].mxu1 }
  0xe1   :  { %v259_v25 = vpop.f32.mrb[2].mxu1 }
  0xe2   :  { %v325_v26 = vpop.f32.mrb[3].mxu1 }
  0xf5   :  { %v309_v27 = vpop.f32.mrb[0].mxu0 }
  0xf6   :  { %v310_v28 = vpop.f32.mrb[1].mxu0 }
  0xf7   :  { %v311_v30 = vadd.f32 %v310_v28, %v309_v27  ;;  %v312_v31 = vpop.f32.mrb[2].mxu0 }
  0xf8   :  { %v313_v32 = vpop.f32.mrb[3].mxu0 }
  0xf9   :  { %v217_v33 = vadd.f32 %v311_v30, %v270_v29 }
  0xfb   :  { %v257_v34 = vadd.f32 %v256_v23, %v217_v33 }
  0xfd   :  { %v262_v35 = vmax.f32 %v257_v34, 0.0 }
  0xff   :  { %v263_v36 = vpack.c.bf16 %v262_v35, %v262_v35 }
 0x101   :  { %265 = vst.msk [vmem:[%s440_s3] sm:$0xf] %vm264_vm2, %v263_v36 }

// kernel: lanenet_forward.10
= control target key start
LH: loop header
LB: loop body
LE: loop exit
PB: predicated region body
PF: predicated region fallthrough
CT: control target
= control target key end

     0   :  { %v609_v35 = vmov 0.0   ;;  %vm610_vm0 = vmmov 0   ;;  %vm330_vm1 = vcmask 523264   ;;  %vm456_vm2 = vcmask 519168   ;;  %s754_s1 = inlined_call_operand.vmem [shape: bf16[576,64], index: 1, kind: input, shape index: {}]   ;;  %s755_s0 = inlined_call_operand.vmem [shape: bf16[8,576], index: 0, kind: input, shape index: {}]   ;;  %s756_s2 = inlined_call_operand.vmem [shape: f32[1,64], index: 2, kind: input, shape index: {}]   ;;  %s757_s3 = inlined_call_operand.vmem [shape: bf16[8,64], index: 3, kind: output, shape index: {}]  }
   0x1   :  { %v568_v0 = vld [vmem:[%s754_s1 + $0x40] sm:$0xff]   ;;  %v572_v4 = vld [vmem:[%s754_s1 + $0x48] sm:$0xff]   ;;  %v576_v8 = vld [vmem:[%s754_s1 + $0x50] sm:$0xff]  }
   0x2   :  { %v569_v1 = vld [vmem:[%s754_s1] sm:$0xff]   ;;  %505 = vmatprep.subr.bf16.mxu0 %v568_v0  ;;  %v573_v5 = vld [vmem:[%s754_s1 + $0x8] sm:$0xff]   ;;  %v577_v9 = vld [vmem:[%s754_s1 + $0x10] sm:$0xff]  }
   0x3   :  { %v570_v2 = vld [vmem:[%s754_s1 + $0xc0] sm:$0xff]   ;;  %506 = vmatpush3.bf16.msra.mxu0 %v569_v1  ;;  %v574_v6 = vld [vmem:[%s754_s1 + $0xc8] sm:$0xff]   ;;  %v578_v10 = vld [vmem:[%s754_s1 + $0xd0] sm:$0xff]  }
   0x4   :  { %v571_v3 = vld [vmem:[%s754_s1 + $0x80] sm:$0xff]   ;;  %527 = vmatprep.subr.bf16.mxu1 %v570_v2  ;;  %507 = vmatprep.subr.bf16.mxu0 %v572_v4  ;;  %v575_v7 = vld [vmem:[%s754_s1 + $0x88] sm:$0xff]   ;;  %v579_v11 = vld [vmem:[%s754_s1 + $0x90] sm:$0xff]  }
   0x5   :  { %528 = vmatpush3.bf16.msra.mxu1 %v571_v3  ;;  %v580_v12 = vld [vmem:[%s754_s1 + $0x58] sm:$0xff]   ;;  %v584_v16 = vld [vmem:[%s754_s1 + $0x60] sm:$0xff]   ;;  %v588_v20 = vld [vmem:[%s754_s1 + $0x68] sm:$0xff]  }
   0x6   :  { %529 = vmatprep.subr.bf16.mxu1 %v574_v6  ;;  %v581_v13 = vld [vmem:[%s754_s1 + $0x18] sm:$0xff]   ;;  %v585_v17 = vld [vmem:[%s754_s1 + $0x20] sm:$0xff]   ;;  %v589_v21 = vld [vmem:[%s754_s1 + $0x28] sm:$0xff]  }
   0x7   :  { %508 = vmatpush3.bf16.msra.mxu0 %v573_v5  ;;  %v582_v14 = vld [vmem:[%s754_s1 + $0xd8] sm:$0xff]   ;;  %v586_v18 = vld [vmem:[%s754_s1 + $0xe0] sm:$0xff]   ;;  %v590_v22 = vld [vmem:[%s754_s1 + $0xe8] sm:$0xff]  }
   0x8   :  { %509 = vmatprep.subr.bf16.mxu0 %v576_v8  ;;  %v583_v15 = vld [vmem:[%s754_s1 + $0x98] sm:$0xff]   ;;  %v587_v19 = vld [vmem:[%s754_s1 + $0xa0] sm:$0xff]   ;;  %v591_v23 = vld [vmem:[%s754_s1 + $0xa8] sm:$0xff]  }
   0x9   :  { %530 = vmatpush3.bf16.msra.mxu1 %v575_v7  ;;  %v592_v24 = vld [vmem:[%s754_s1 + $0x70] sm:$0xff]   ;;  %v596_v28 = vld [vmem:[%s754_s1 + $0x78] sm:$0xff]   ;;  %v15_v31 = vld [vmem:[%s755_s0] sm:$0xff] }
   0xa   :  { %531 = vmatprep.subr.bf16.mxu1 %v578_v10  ;;  %v593_v25 = vld [vmem:[%s754_s1 + $0x30] sm:$0xff]   ;;  %v597_v29 = vld [vmem:[%s754_s1 + $0x38] sm:$0xff]   ;;  %v463_v32 = vcombine.low %v15_v31, %v15_v31  ;;  %v464_v33 = vcombine.high %v15_v31, %v15_v31  ;;  %v16_v36 = vld [vmem:[%s755_s0 + $0x8] sm:$0xff] }
   0xb   :  { %510 = vmatpush3.bf16.msra.mxu0 %v577_v9  ;;  %v594_v26 = vld [vmem:[%s754_s1 + $0xf0] sm:$0xff]   ;;  %v598_v30 = vld [vmem:[%s754_s1 + $0xf8] sm:$0xff]   ;;  %v465_v37 = vcombine.low %v16_v36, %v16_v36  ;;  %v466_v38 = vcombine.high %v16_v36, %v16_v36  ;;  %v605_v39 = vld [vmem:[%s754_s1 + $0x100] sm:$0xff]  }
   0xc   :  { %511 = vmatprep.subr.bf16.mxu0 %v580_v12  ;;  %v595_v27 = vld [vmem:[%s754_s1 + $0xb0] sm:$0xff]   ;;  %v602_v34 = vld [vmem:[%s754_s1 + $0xb8] sm:$0xff]   ;;  %366 = vmatprep.mubr.bf16.mxu0 %v464_v33  ;;  %v606_v40 = vld [vmem:[%s754_s1 + $0x108] sm:$0xff]  }
   0xd   :  { %532 = vmatpush3.bf16.msra.mxu1 %v579_v11  ;;  %406 = vmatprep.mubr.bf16.mxu1 %v466_v38  ;;  %v607_v41 = vld [vmem:[%s754_s1 + $0x110] sm:$0xff]   ;;  %v608_v42 = vld [vmem:[%s754_s1 + $0x118] sm:$0xff]   ;;  %v462_v45 = vld [vmem:[%s756_s2] ss:$0 sm:$0xff] }
   0xe   :  { %533 = vmatprep.subr.bf16.mxu1 %v582_v14  ;;  %v601_v43 = vld [vmem:[%s755_s0 + $0x10] ss:$0 sps:$4 sm:$0xff]  }
   0xf   :  { %512 = vmatpush3.bf16.msra.mxu0 %v581_v13 }
  0x10   :  { %513 = vmatprep.subr.bf16.mxu0 %v584_v16 }
  0x11   :  { %534 = vmatpush3.bf16.msra.mxu1 %v583_v15 }
  0x12   :  { %535 = vmatprep.subr.bf16.mxu1 %v586_v18 }
  0x13   :  { %514 = vmatpush3.bf16.msra.mxu0 %v585_v17 }
  0x14   :  { %515 = vmatprep.subr.bf16.mxu0 %v588_v20 }
  0x15   :  { %536 = vmatpush3.bf16.msra.mxu1 %v587_v19 }
  0x16   :  { %537 = vmatprep.subr.bf16.mxu1 %v590_v22 }
  0x17   :  { %516 = vmatpush3.bf16.msra.mxu0 %v589_v21 }
  0x18   :  { %517 = vmatprep.subr.bf16.mxu0 %v592_v24 }
  0x19   :  { %538 = vmatpush3.bf16.msra.mxu1 %v591_v23 }
  0x1a   :  { %539 = vmatprep.subr.bf16.mxu1 %v594_v26 }
  0x1b   :  { %518 = vmatpush3.bf16.msra.mxu0 %v593_v25 }
  0x1c   :  { %519 = vmatprep.subr.bf16.mxu0 %v596_v28 }
  0x1d   :  { %540 = vmatpush3.bf16.msra.mxu1 %v595_v27 }
  0x1e   :  { %541 = vmatprep.subr.bf16.mxu1 %v598_v30 }
  0x1f   :  { %520 = vmatpush3.bf16.msra.mxu0 %v597_v29 }
  0x20   :  { %554 = vmatprep.subr.bf16.mxu0 %v609_v35 }
  0x21   :  { %542 = vmatpush3.bf16.msra.mxu1 %v602_v34 }
  0x22   :  { %367 = vmatmul.mubr.bf16.vlgmr.msra.gmra.mrb[0].mxu0 %v463_v32 }
  0x23   :  { %555 = vmatpush3.bf16.msra.mxu0 %v605_v39  ;;  %562 = vmatprep.mubr.msk.bf16.mxu0 %vm610_vm0, %v609_v35 }
  0x24   :  { %407 = vmatmul.mubr.bf16.vlgmr.msra.gmra.mrb[0].mxu1 %v465_v37  ;;  %556 = vmatprep.subr.bf16.mxu0 %v609_v35 }
  0x27   :  { %557 = vmatpush3.bf16.msra.mxu0 %v606_v40 }
  0x28   :  { %558 = vmatprep.subr.bf16.mxu0 %v609_v35 }
  0x2b   :  { %559 = vmatpush3.bf16.msra.mxu0 %v607_v41 }
  0x2c   :  { %560 = vmatprep.subr.bf16.mxu0 %v609_v35 }
  0x2f   :  { %561 = vmatpush3.bf16.msra.mxu0 %v608_v42 }
  0x32   :  { %563 = vmatmul.mubr.msk.bf16.vlgmr.msra.gmra.mrb[4].mxu0 %vm330_vm1, %v601_v43 }
  0xf5   :  { %v521_v44 = vpop.f32.mrb[0].mxu0 }
  0xf6   :  { %v522_v46 = vpop.f32.mrb[1].mxu0 }
  0xf7   :  { %v523_v47 = vadd.f32 %v522_v46, %v521_v44  ;;  %v524_v48 = vpop.f32.mrb[2].mxu0  ;;  %v543_v49 = vpop.f32.mrb[0].mxu1 }
  0xf8   :  { %v525_v50 = vpop.f32.mrb[3].mxu0  ;;  %v544_v51 = vpop.f32.mrb[1].mxu1 }
  0xf9   :  { %v369_v52 = vadd.f32 %v523_v47, %v462_v45  ;;  %v545_v53 = vadd.f32 %v544_v51, %v543_v49  ;;  %v546_v54 = vpop.f32.mrb[2].mxu1 }
  0xfa   :  { %v547_v55 = vpop.f32.mrb[3].mxu1 }
  0xfb   :  { %v409_v56 = vadd.f32 %v545_v53, %v369_v52 }
 0x105   :  { %v448_v57 = vpop.f32.mrb[4].mxu0 }
 0x106   :  { %v449_v58 = vadd.f32 %v448_v57, %v409_v56  ;;  %v564_v59 = vpop.f32.mrb[5].mxu0 }
 0x107   :  { %v451_v60 = vpop.f32.mrb[6].mxu0 }
 0x108   :  { %v454_v61 = vmax.f32 %v449_v58, 0.0  ;;  %v565_v62 = vpop.f32.mrb[7].mxu0 }
 0x10a   :  { %v455_v63 = vpack.c.bf16 %v454_v61, %v454_v61 }
 0x10c   :  { %457 = vst.msk [vmem:[%s757_s3] sm:$0xf] %vm456_vm2, %v455_v63 }

// kernel: lanenet_forward.11
= control target key start
LH: loop header
LB: loop body
LE: loop exit
PB: predicated region body
PF: predicated region fallthrough
CT: control target
= control target key end

     0   :  { %vm372_vm0 = vcmask 523264   ;;  %vm546_vm1 = vcmask 257024   ;;  %s909_s1 = inlined_call_operand.vmem [shape: bf16[576,32], index: 1, kind: input, shape index: {}]   ;;  %s910_s0 = inlined_call_operand.vmem [shape: bf16[32,576], index: 0, kind: input, shape index: {}]   ;;  %s911_s2 = inlined_call_operand.vmem [shape: f32[1,32], index: 2, kind: input, shape index: {}]   ;;  %s912_s3 = inlined_call_operand.vmem [shape: bf16[32,32], index: 3, kind: output, shape index: {}]  }
   0x1   :  { %v686_v0 = vld [vmem:[%s909_s1 + $0x40] sm:$0xff]   ;;  %v690_v4 = vld [vmem:[%s909_s1 + $0x48] sm:$0xff]   ;;  %v694_v8 = vld [vmem:[%s909_s1 + $0x50] sm:$0xff]  }
   0x2   :  { %v687_v1 = vld [vmem:[%s909_s1] sm:$0xff]   ;;  %612 = vmatprep.subr.bf16.mxu0 %v686_v0  ;;  %v691_v5 = vld [vmem:[%s909_s1 + $0x8] sm:$0xff]   ;;  %v695_v9 = vld [vmem:[%s909_s1 + $0x10] sm:$0xff]  }
   0x3   :  { %v688_v2 = vld [vmem:[%s909_s1 + $0xc0] sm:$0xff]   ;;  %613 = vmatpush3.bf16.msra.mxu0 %v687_v1  ;;  %v692_v6 = vld [vmem:[%s909_s1 + $0xc8] sm:$0xff]   ;;  %v696_v10 = vld [vmem:[%s909_s1 + $0xd0] sm:$0xff]  }
   0x4   :  { %v689_v3 = vld [vmem:[%s909_s1 + $0x80] sm:$0xff]   ;;  %640 = vmatprep.subr.bf16.mxu1 %v688_v2  ;;  %614 = vmatprep.subr.bf16.mxu0 %v690_v4  ;;  %v693_v7 = vld [vmem:[%s909_s1 + $0x88] sm:$0xff]   ;;  %v697_v11 = vld [vmem:[%s909_s1 + $0x90] sm:$0xff]  }
   0x5   :  { %641 = vmatpush3.bf16.msra.mxu1 %v689_v3  ;;  %v698_v12 = vld [vmem:[%s909_s1 + $0x58] sm:$0xff]   ;;  %v702_v16 = vld [vmem:[%s909_s1 + $0x60] sm:$0xff]   ;;  %v706_v20 = vld [vmem:[%s909_s1 + $0x68] sm:$0xff]  }
   0x6   :  { %642 = vmatprep.subr.bf16.mxu1 %v692_v6  ;;  %v699_v13 = vld [vmem:[%s909_s1 + $0x18] sm:$0xff]   ;;  %v703_v17 = vld [vmem:[%s909_s1 + $0x20] sm:$0xff]   ;;  %v707_v21 = vld [vmem:[%s909_s1 + $0x28] sm:$0xff]  }
   0x7   :  { %615 = vmatpush3.bf16.msra.mxu0 %v691_v5  ;;  %v700_v14 = vld [vmem:[%s909_s1 + $0xd8] sm:$0xff]   ;;  %v704_v18 = vld [vmem:[%s909_s1 + $0xe0] sm:$0xff]   ;;  %v708_v22 = vld [vmem:[%s909_s1 + $0xe8] sm:$0xff]  }
   0x8   :  { %616 = vmatprep.subr.bf16.mxu0 %v694_v8  ;;  %v701_v15 = vld [vmem:[%s909_s1 + $0x98] sm:$0xff]   ;;  %v705_v19 = vld [vmem:[%s909_s1 + $0xa0] sm:$0xff]   ;;  %v709_v23 = vld [vmem:[%s909_s1 + $0xa8] sm:$0xff]  }
   0x9   :  { %643 = vmatpush3.bf16.msra.mxu1 %v693_v7  ;;  %v710_v24 = vld [vmem:[%s909_s1 + $0x70] sm:$0xff]   ;;  %v714_v28 = vld [vmem:[%s909_s1 + $0x78] sm:$0xff]   ;;  %v721_v34 = vld [vmem:[%s909_s1 + $0x100] sm:$0xff]  }
   0xa   :  { %644 = vmatprep.subr.bf16.mxu1 %v696_v10  ;;  %v711_v25 = vld [vmem:[%s909_s1 + $0x30] sm:$0xff]   ;;  %v715_v29 = vld [vmem:[%s909_s1 + $0x38] sm:$0xff]   ;;  %v724_v36 = vld [vmem:[%s910_s0 + $0xc] ss:$20 sps:$4 sm:$0xff]  }
   0xb   :  { %617 = vmatpush3.bf16.msra.mxu0 %v695_v9  ;;  %v712_v26 = vld [vmem:[%s909_s1 + $0xf0] sm:$0xff]   ;;  %v716_v30 = vld [vmem:[%s909_s1 + $0xf8] sm:$0xff]   ;;  %v725_v37 = vld [vmem:[%s909_s1 + $0x108] sm:$0xff]   ;;  %460 = vmatprep.mubr.bf16.mxu1 %v724_v36 }
   0xc   :  { %618 = vmatprep.subr.bf16.mxu0 %v698_v12  ;;  %v713_v27 = vld [vmem:[%s909_s1 + $0xb0] sm:$0xff]   ;;  %v719_v32 = vld [vmem:[%s910_s0 + $0x4] ss:$20 sps:$4 sm:$0xff]   ;;  %v722_v35 = vld [vmem:[%s910_s0 + $0x8] ss:$20 sps:$4 sm:$0xff]  }
   0xd   :  { %645 = vmatpush3.bf16.msra.mxu1 %v697_v11  ;;  %v717_v31 = vld [vmem:[%s910_s0] ss:$20 sps:$4 sm:$0xff]   ;;  %v720_v33 = vld [vmem:[%s909_s1 + $0xb8] sm:$0xff]   ;;  %411 = vmatprep.mubr.bf16.mxu0 %v719_v32  ;;  %v732_v42 = vld [vmem:[%s910_s0 + $0x30] ss:$20 sps:$4 sm:$0xff]  }
   0xe   :  { %646 = vmatprep.subr.bf16.mxu1 %v700_v14  ;;  %v726_v38 = vld [vmem:[%s910_s0 + $0x2c] ss:$20 sps:$4 sm:$0xff]   ;;  %v728_v39 = vld [vmem:[%s910_s0 + $0x28] ss:$20 sps:$4 sm:$0xff]   ;;  %v729_v40 = vld [vmem:[%s909_s1 + $0x110] sm:$0xff]  }
   0xf   :  { %619 = vmatpush3.bf16.msra.mxu0 %v699_v13  ;;  %v730_v41 = vld [vmem:[%s910_s0 + $0x34] ss:$20 sps:$4 sm:$0xff]   ;;  %v733_v43 = vld [vmem:[%s909_s1 + $0x118] sm:$0xff]   ;;  %v734_v44 = vld [vmem:[%s910_s0 + $0x10] ss:$20 sps:$4 sm:$0xff]  }
  0x10   :  { %620 = vmatprep.subr.bf16.mxu0 %v702_v16  ;;  %v735_v45 = vld [vmem:[%s910_s0 + $0x38] ss:$20 sps:$4 sm:$0xff]   ;;  %v555_v47 = vld [vmem:[%s911_s2] ss:$0 sm:$0xff] }
  0x11   :  { %647 = vmatpush3.bf16.msra.mxu1 %v701_v15 }
  0x12   :  { %648 = vmatprep.subr.bf16.mxu1 %v704_v18 }
  0x13   :  { %621 = vmatpush3.bf16.msra.mxu0 %v703_v17 }
  0x14   :  { %622 = vmatprep.subr.bf16.mxu0 %v706_v20 }
  0x15   :  { %649 = vmatpush3.bf16.msra.mxu1 %v705_v19 }
  0x16   :  { %650 = vmatprep.subr.bf16.mxu1 %v708_v22 }
  0x17   :  { %623 = vmatpush3.bf16.msra.mxu0 %v707_v21 }
  0x18   :  { %624 = vmatprep.subr.bf16.mxu0 %v710_v24 }
  0x19   :  { %651 = vmatpush3.bf16.msra.mxu1 %v709_v23 }
  0x1a   :  { %652 = vmatprep.subr.bf16.mxu1 %v712_v26 }
  0x1b   :  { %625 = vmatpush3.bf16.msra.mxu0 %v711_v25 }
  0x1c   :  { %626 = vmatprep.subr.bf16.mxu0 %v714_v28 }
  0x1d   :  { %653 = vmatpush3.bf16.msra.mxu1 %v713_v27 }
  0x1e   :  { %654 = vmatprep.subr.bf16.mxu1 %v716_v30 }
  0x1f   :  { %627 = vmatpush3.bf16.msra.mxu0 %v715_v29 }
  0x20   :  { %674 = vmatprep.subr.bf16.mxu0 %v721_v34 }
  0x21   :  { %655 = vmatpush3.bf16.msra.mxu1 %v720_v33 }
  0x22   :  { %412 = vmatmul.mubr.bf16.vlgmr.msra.gmra.mrb[0].mxu0 %v717_v31 }
  0x23   :  { %675 = vmatpush3.bf16.msra.mxu0 %v721_v34  ;;  %419 = vmatprep.mubr.bf16.mxu0 %v726_v38 }
  0x24   :  { %461 = vmatmul.mubr.bf16.vlgmr.msra.gmra.mrb[0].mxu1 %v722_v35  ;;  %676 = vmatprep.subr.bf16.mxu0 %v725_v37 }
  0x25   :  { %468 = vmatprep.mubr.bf16.mxu1 %v730_v41 }
  0x27   :  { %677 = vmatpush3.bf16.msra.mxu0 %v725_v37 }
  0x28   :  { %678 = vmatprep.subr.bf16.mxu0 %v729_v40 }
  0x2a   :  { %420 = vmatmul.mubr.bf16.gmra.mrb[4].mxu0 %v728_v39 }
  0x2b   :  { %682 = vmatprep.mubr.msk.bf16.mxu0 %vm372_vm0, %v734_v44  ;;  %679 = vmatpush3.bf16.msra.mxu0 %v729_v40 }
  0x2c   :  { %469 = vmatmul.mubr.bf16.gmra.mrb[4].mxu1 %v732_v42  ;;  %680 = vmatprep.subr.bf16.mxu0 %v733_v43 }
  0x2f   :  { %681 = vmatpush3.bf16.msra.mxu0 %v733_v43 }
  0x32   :  { %683 = vmatmul.mubr.msk.bf16.vlgmr.msra.gmra.mrb[8].mxu0 %vm372_vm0, %v735_v45 }
  0xf5   :  { %v628_v46 = vpop.f32.mrb[0].mxu0 }
  0xf6   :  { %v629_v48 = vpop.f32.mrb[1].mxu0 }
  0xf7   :  { %v630_v49 = vadd.f32 %v629_v48, %v628_v46  ;;  %v631_v50 = vpop.f32.mrb[2].mxu0  ;;  %v656_v51 = vpop.f32.mrb[0].mxu1 }
  0xf8   :  { %v632_v52 = vpop.f32.mrb[3].mxu0  ;;  %v657_v55 = vpop.f32.mrb[1].mxu1 }
  0xf9   :  { %v414_v53 = vadd.f32 %v630_v49, %v555_v47  ;;  %v633_v54 = vadd.f32 %v632_v52, %v631_v50  ;;  %v658_v56 = vadd.f32 %v657_v55, %v656_v51  ;;  %v659_v57 = vpop.f32.mrb[2].mxu1 }
  0xfa   :  { %v660_v59 = vpop.f32.mrb[3].mxu1 }
  0xfb   :  { %v417_v58 = vadd.f32 %v633_v54, %v555_v47  ;;  %v661_v60 = vadd.f32 %v660_v59, %v659_v57  ;;  %v463_v61 = vadd.f32 %v658_v56, %v414_v53 }
  0xfd   :  { %v634_v62 = vpop.f32.mrb[4].mxu0  ;;  %v466_v0 = vadd.f32 %v661_v60, %v417_v58 }
  0xfe   :  { %v635_v63 = vpop.f32.mrb[5].mxu0 }
  0xff   :  { %v636_v1 = vadd.f32 %v635_v63, %v634_v62  ;;  %v637_v2 = vpop.f32.mrb[6].mxu0  ;;  %v662_v3 = vpop.f32.mrb[4].mxu1 }
 0x100   :  { %v638_v4 = vpop.f32.mrb[7].mxu0  ;;  %v663_v7 = vpop.f32.mrb[5].mxu1 }
 0x101   :  { %v422_v5 = vadd.f32 %v636_v1, %v555_v47  ;;  %v639_v6 = vadd.f32 %v638_v4, %v637_v2  ;;  %v664_v8 = vadd.f32 %v663_v7, %v662_v3  ;;  %v665_v9 = vpop.f32.mrb[6].mxu1 }
 0x102   :  { %v666_v11 = vpop.f32.mrb[7].mxu1 }
 0x103   :  { %v425_v10 = vadd.f32 %v639_v6, %v555_v47  ;;  %v667_v12 = vadd.f32 %v666_v11, %v665_v9  ;;  %v471_v13 = vadd.f32 %v664_v8, %v422_v5 }
 0x105   :  { %v684_v14 = vpop.f32.mrb[8].mxu0  ;;  %v474_v15 = vadd.f32 %v667_v12, %v425_v10 }
 0x106   :  { %v520_v16 = vadd.f32 %v684_v14, %v471_v13  ;;  %v511_v17 = vpop.f32.mrb[9].mxu0 }
 0x107   :  { %v512_v18 = vadd.f32 %v511_v17, %v463_v61  ;;  %v685_v19 = vpop.f32.mrb[10].mxu0 }
 0x108   :  { %v528_v20 = vmax.f32 %v520_v16, 0.0  ;;  %v523_v21 = vadd.f32 %v685_v19, %v474_v15  ;;  %v514_v22 = vpop.f32.mrb[11].mxu0 }
 0x109   :  { %v526_v23 = vmax.f32 %v512_v18, 0.0  ;;  %v515_v24 = vadd.f32 %v514_v22, %v466_v0 }
 0x10a   :  { %v610_v25 = vpack.c.bf16 %v528_v20, %v528_v20  ;;  %v529_v26 = vmax.f32 %v523_v21, 0.0 }
 0x10b   :  { %v608_v27 = vpack.c.bf16 %v526_v23, %v526_v23  ;;  %v527_v28 = vmax.f32 %v515_v24, 0.0 }
 0x10c   :  { %549 = vst.msk [vmem:[%s912_s3 + $0x8] sm:$0xf] %vm546_vm1, %v610_v25  ;;  %v611_v29 = vpack.c.bf16 %v529_v26, %v529_v26 }
 0x10d   :  { %547 = vst.msk [vmem:[%s912_s3] sm:$0xf] %vm546_vm1, %v608_v27  ;;  %v609_v30 = vpack.c.bf16 %v527_v28, %v527_v28 }
 0x10e   :  { %550 = vst.msk [vmem:[%s912_s3 + $0xc] sm:$0xf] %vm546_vm1, %v611_v29 }
 0x10f   :  { %548 = vst.msk [vmem:[%s912_s3 + $0x4] sm:$0xf] %vm546_vm1, %v609_v30 }

// kernel: lanenet_forward.12
= control target key start
LH: loop header
LB: loop body
LE: loop exit
PB: predicated region body
PF: predicated region fallthrough
CT: control target
= control target key end

     0   :  { %vm318_vm0 = vcmask 261120   ;;  %vm537_vm1 = vcmask 39936   ;;  %s1020_s1 = inlined_call_operand.vmem [shape: bf16[288,5], index: 1, kind: input, shape index: {}]   ;;  %s1021_s0 = inlined_call_operand.vmem [shape: bf16[128,288], index: 0, kind: input, shape index: {}]   ;;  %s1022_s2 = inlined_call_operand.vmem [shape: f32[1,5], index: 2, kind: input, shape index: {}]   ;;  %s1023_s3 = inlined_call_operand.vmem [shape: f32[128,5], index: 3, kind: output, shape index: {}]  }
   0x1   :  { %v719_v0 = vld [vmem:[%s1020_s1 + $0x40] sm:$0xff]   ;;  %v721_v2 = vld [vmem:[%s1020_s1 + $0x48] sm:$0xff]   ;;  %v723_v4 = vld [vmem:[%s1020_s1 + $0x50] sm:$0xff]  }
   0x2   :  { %v720_v1 = vld [vmem:[%s1020_s1] sm:$0xff]   ;;  %609 = vmatprep.subr.bf16.mxu0 %v719_v0  ;;  %703 = vmatprep.subr.bf16.mxu1 %v719_v0  ;;  %v722_v3 = vld [vmem:[%s1020_s1 + $0x8] sm:$0xff]   ;;  %v724_v5 = vld [vmem:[%s1020_s1 + $0x10] sm:$0xff]  }
   0x3   :  { %610 = vmatpush3.bf16.msra.mxu0 %v720_v1  ;;  %711 = vmatpush3.bf16.msra.mxu1 %v720_v1  ;;  %v725_v6 = vld [vmem:[%s1020_s1 + $0x58] sm:$0xff]   ;;  %v727_v8 = vld [vmem:[%s1020_s1 + $0x60] sm:$0xff]   ;;  %v729_v10 = vld [vmem:[%s1020_s1 + $0x68] sm:$0xff]  }
   0x4   :  { %611 = vmatprep.subr.bf16.mxu0 %v721_v2  ;;  %704 = vmatprep.subr.bf16.mxu1 %v721_v2  ;;  %v726_v7 = vld [vmem:[%s1020_s1 + $0x18] sm:$0xff]   ;;  %v728_v9 = vld [vmem:[%s1020_s1 + $0x20] sm:$0xff]   ;;  %v730_v13 = vld [vmem:[%s1020_s1 + $0x28] sm:$0xff]  }
   0x5   :  { %v737_v11 = vld [vmem:[%s1021_s0 + $0x4] ss:$12 sps:$4 sm:$0xff]   ;;  %v740_v12 = vld [vmem:[%s1021_s0 + $0x94] ss:$12 sps:$4 sm:$0xff]   ;;  %v733_v16 = vld [vmem:[%s1020_s1 + $0x78] sm:$0xff]  }
   0x6   :  { %v731_v14 = vld [vmem:[%s1020_s1 + $0x70] sm:$0xff]   ;;  %375 = vmatprep.mubr.bf16.mxu0 %v737_v11  ;;  %423 = vmatprep.mubr.bf16.mxu1 %v740_v12  ;;  %v734_v17 = vld [vmem:[%s1020_s1 + $0x38] sm:$0xff]   ;;  %v735_v18 = vld [vmem:[%s1021_s0] ss:$12 sps:$4 sm:$0xff]  }
   0x7   :  { %612 = vmatpush3.bf16.msra.mxu0 %v722_v3  ;;  %712 = vmatpush3.bf16.msra.mxu1 %v722_v3  ;;  %v732_v15 = vld [vmem:[%s1020_s1 + $0x30] sm:$0xff]   ;;  %v741_v19 = vld [vmem:[%s1020_s1 + $0x80] sm:$0xff]   ;;  %v742_v21 = vld [vmem:[%s1021_s0 + $0x1c] ss:$12 sps:$4 sm:$0xff]  }
   0x8   :  { %613 = vmatprep.subr.bf16.mxu0 %v723_v4  ;;  %705 = vmatprep.subr.bf16.mxu1 %v723_v4  ;;  %v738_v20 = vld [vmem:[%s1021_s0 + $0x90] ss:$12 sps:$4 sm:$0xff]   ;;  %v744_v22 = vld [vmem:[%s1021_s0 + $0xac] ss:$12 sps:$4 sm:$0xff]   ;;  %v747_v25 = vld [vmem:[%s1021_s0 + $0xa8] ss:$12 sps:$4 sm:$0xff]  }
   0x9   :  { %v748_v23 = vld [vmem:[%s1020_s1 + $0x88] sm:$0xff]   ;;  %v746_v24 = vld [vmem:[%s1021_s0 + $0x18] ss:$12 sps:$4 sm:$0xff]   ;;  %v749_v26 = vld [vmem:[%s1021_s0 + $0x34] ss:$12 sps:$4 sm:$0xff]  }
   0xa   :  { %v751_v27 = vld [vmem:[%s1021_s0 + $0x8] ss:$12 sps:$4 sm:$0xff]   ;;  %v752_v28 = vld [vmem:[%s1021_s0 + $0x30] ss:$12 sps:$4 sm:$0xff]   ;;  %v753_v29 = vld [vmem:[%s1021_s0 + $0x20] ss:$12 sps:$4 sm:$0xff]  }
   0xb   :  { %614 = vmatpush3.bf16.msra.mxu0 %v724_v5  ;;  %713 = vmatpush3.bf16.msra.mxu1 %v724_v5  ;;  %v754_v30 = vld [vmem:[%s1021_s0 + $0x4c] ss:$12 sps:$4 sm:$0xff]   ;;  %v757_v32 = vld [vmem:[%s1021_s0 + $0x48] ss:$12 sps:$4 sm:$0xff]   ;;  %v758_v33 = vld [vmem:[%s1021_s0 + $0x50] ss:$12 sps:$4 sm:$0xff]  }
   0xc   :  { %615 = vmatprep.subr.bf16.mxu0 %v725_v6  ;;  %706 = vmatprep.subr.bf16.mxu1 %v725_v6  ;;  %v756_v31 = vld [vmem:[%s1021_s0 + $0x38] ss:$12 sps:$4 sm:$0xff]   ;;  %v761_v35 = vld [vmem:[%s1021_s0 + $0x68] ss:$12 sps:$4 sm:$0xff]   ;;  %v762_v36 = vld [vmem:[%s1021_s0 + $0x60] ss:$12 sps:$4 sm:$0xff]  }
   0xd   :  { %v759_v34 = vld [vmem:[%s1021_s0 + $0x64] ss:$12 sps:$4 sm:$0xff]   ;;  %v763_v37 = vld [vmem:[%s1021_s0 + $0x80] ss:$12 sps:$4 sm:$0xff]   ;;  %v764_v38 = vld [vmem:[%s1021_s0 + $0x7c] ss:$12 sps:$4 sm:$0xff]  }
   0xe   :  { %v766_v39 = vld [vmem:[%s1021_s0 + $0x98] ss:$12 sps:$4 sm:$0xff]   ;;  %v768_v41 = vld [vmem:[%s1021_s0 + $0xb0] ss:$12 sps:$4 sm:$0xff]   ;;  %v934_v2 = vld [vmem:[%s1022_s2] ss:$0 sm:$0xff] }
   0xf   :  { %616 = vmatpush3.bf16.msra.mxu0 %v726_v7  ;;  %714 = vmatpush3.bf16.msra.mxu1 %v726_v7  ;;  %v767_v40 = vld [vmem:[%s1021_s0 + $0x78] ss:$12 sps:$4 sm:$0xff]  }
  0x10   :  { %617 = vmatprep.subr.bf16.mxu0 %v727_v8  ;;  %707 = vmatprep.subr.bf16.mxu1 %v727_v8 }
  0x13   :  { %618 = vmatpush3.bf16.msra.mxu0 %v728_v9  ;;  %715 = vmatpush3.bf16.msra.mxu1 %v728_v9 }
  0x14   :  { %619 = vmatprep.subr.bf16.mxu0 %v729_v10  ;;  %708 = vmatprep.subr.bf16.mxu1 %v729_v10 }
  0x17   :  { %620 = vmatpush3.bf16.msra.mxu0 %v730_v13  ;;  %716 = vmatpush3.bf16.msra.mxu1 %v730_v13 }
  0x18   :  { %621 = vmatprep.subr.bf16.mxu0 %v731_v14  ;;  %709 = vmatprep.subr.bf16.mxu1 %v731_v14 }
  0x1b   :  { %622 = vmatpush3.bf16.msra.mxu0 %v732_v15  ;;  %717 = vmatpush3.bf16.msra.mxu1 %v732_v15 }
  0x1c   :  { %623 = vmatprep.subr.bf16.mxu0 %v733_v16  ;;  %710 = vmatprep.subr.bf16.mxu1 %v733_v16 }
  0x1f   :  { %624 = vmatpush3.bf16.msra.mxu0 %v734_v17  ;;  %718 = vmatpush3.bf16.msra.mxu1 %v734_v17 }
  0x20   :  { %683 = vmatprep.subr.bf16.mxu1 %v741_v19 }
  0x22   :  { %376 = vmatmul.mubr.bf16.vlgmr.msra.gmra.mrb[0].mxu0 %v735_v18  ;;  %424 = vmatmul.mubr.bf16.vlgmr.msra.gmra.mrb[0].mxu1 %v738_v20 }
  0x23   :  { %684 = vmatpush3.bf16.msra.mxu1 %v741_v19  ;;  %383 = vmatprep.mubr.bf16.mxu0 %v742_v21 }
  0x24   :  { %431 = vmatprep.mubr.bf16.mxu1 %v744_v22  ;;  %685 = vmatprep.subr.bf16.mxu1 %v748_v23 }
  0x27   :  { %686 = vmatpush3.bf16.msra.mxu1 %v748_v23 }
  0x2a   :  { %384 = vmatmul.mubr.bf16.gmra.mrb[4].mxu0 %v746_v24  ;;  %432 = vmatmul.mubr.bf16.gmra.mrb[4].mxu1 %v747_v25 }
  0x2b   :  { %391 = vmatprep.mubr.bf16.mxu0 %v749_v26  ;;  %687 = vmatprep.mubr.msk.bf16.mxu1 %vm318_vm0, %v751_v27 }
  0x32   :  { %392 = vmatmul.mubr.bf16.gmra.mrb[8].mxu0 %v752_v28  ;;  %688 = vmatmul.mubr.msk.bf16.vlgmr.msra.gmra.mrb[8].mxu1 %vm318_vm0, %v753_v29 }
  0x33   :  { %399 = vmatprep.mubr.bf16.mxu0 %v754_v30  ;;  %691 = vmatprep.mubr.msk.bf16.mxu1 %vm318_vm0, %v756_v31 }
  0x3a   :  { %400 = vmatmul.mubr.bf16.gmra.mrb[12].mxu0 %v757_v32  ;;  %692 = vmatmul.mubr.msk.bf16.gmra.mrb[12].mxu1 %vm318_vm0, %v758_v33 }
  0x3b   :  { %407 = vmatprep.mubr.bf16.mxu0 %v759_v34  ;;  %695 = vmatprep.mubr.msk.bf16.mxu1 %vm318_vm0, %v761_v35 }
  0x42   :  { %408 = vmatmul.mubr.bf16.gmra.mrb[16].mxu0 %v762_v36  ;;  %696 = vmatmul.mubr.msk.bf16.gmra.mrb[16].mxu1 %vm318_vm0, %v763_v37 }
  0x43   :  { %415 = vmatprep.mubr.bf16.mxu0 %v764_v38  ;;  %699 = vmatprep.mubr.msk.bf16.mxu1 %vm318_vm0, %v766_v39 }
  0x4a   :  { %416 = vmatmul.mubr.bf16.gmra.mrb[20].mxu0 %v767_v40  ;;  %700 = vmatmul.mubr.msk.bf16.gmra.mrb[20].mxu1 %vm318_vm0, %v768_v41 }
  0xf5   :  { %v625_v42 = vpop.f32.mrb[0].mxu0  ;;  %v661_v43 = vpop.f32.mrb[0].mxu1 }
  0xf6   :  { %v626_v44 = vpop.f32.mrb[1].mxu0  ;;  %v662_v45 = vpop.f32.mrb[1].mxu1 }
  0xf7   :  { %v627_v46 = vadd.f32 %v626_v44, %v625_v42  ;;  %v628_v47 = vpop.f32.mrb[2].mxu0  ;;  %v923_v48 = vadd.f32 %v662_v45, %v661_v43  ;;  %v664_v49 = vpop.f32.mrb[2].mxu1 }
  0xf8   :  { %v629_v50 = vpop.f32.mrb[3].mxu0  ;;  %v665_v51 = vpop.f32.mrb[3].mxu1 }
  0xf9   :  { %v630_v52 = vadd.f32 %v629_v50, %v628_v47  ;;  %v925_v53 = vadd.f32 %v665_v51, %v664_v49  ;;  %v378_v6 = vadd.f32 %v627_v46, %v934_v2 }
  0xfb   :  { %v381_v15 = vadd.f32 %v630_v52, %v934_v2 }
  0xfd   :  { %v631_v54 = vpop.f32.mrb[4].mxu0  ;;  %v667_v55 = vpop.f32.mrb[4].mxu1 }
  0xfe   :  { %v632_v56 = vpop.f32.mrb[5].mxu0  ;;  %v668_v57 = vpop.f32.mrb[5].mxu1 }
  0xff   :  { %v633_v58 = vadd.f32 %v632_v56, %v631_v54  ;;  %v634_v59 = vpop.f32.mrb[6].mxu0  ;;  %v927_v60 = vadd.f32 %v668_v57, %v667_v55  ;;  %v670_v61 = vpop.f32.mrb[6].mxu1 }
 0x100   :  { %v635_v62 = vpop.f32.mrb[7].mxu0  ;;  %v671_v63 = vpop.f32.mrb[7].mxu1 }
 0x101   :  { %v636_v0 = vadd.f32 %v635_v62, %v634_v59  ;;  %v929_v1 = vadd.f32 %v671_v63, %v670_v61  ;;  %v386_v3 = vadd.f32 %v633_v58, %v934_v2  ;;  %v434_v54 = vadd.f32 %v927_v60, %v934_v2 }
 0x102   :  { %v426_v58 = vadd.f32 %v923_v48, %v934_v2 }
 0x103   :  { %v389_v10 = vadd.f32 %v636_v0, %v934_v2  ;;  %v437_v63 = vadd.f32 %v929_v1, %v934_v2 }
 0x105   :  { %v637_v4 = vpop.f32.mrb[8].mxu0  ;;  %v689_v5 = vpop.f32.mrb[8].mxu1 }
 0x106   :  { %v483_v7 = vadd.f32 %v689_v5, %v386_v3  ;;  %v638_v8 = vpop.f32.mrb[9].mxu0  ;;  %v474_v9 = vpop.f32.mrb[9].mxu1  ;;  %v429_v5 = vadd.f32 %v925_v53, %v934_v2 }
 0x107   :  { %v639_v11 = vadd.f32 %v638_v8, %v637_v4  ;;  %v475_v12 = vadd.f32 %v474_v9, %v378_v6  ;;  %v640_v13 = vpop.f32.mrb[10].mxu0  ;;  %v690_v14 = vpop.f32.mrb[10].mxu1 }
 0x108   :  { %540 = vst.msk [vmem:[%s1023_s3 + $0x10] sm:$0xff] %vm537_vm1, %v483_v7  ;;  %v486_v16 = vadd.f32 %v690_v14, %v389_v10  ;;  %v641_v17 = vpop.f32.mrb[11].mxu0  ;;  %v477_v18 = vpop.f32.mrb[11].mxu1 }
 0x109   :  { %538 = vst.msk [vmem:[%s1023_s3] sm:$0xff] %vm537_vm1, %v475_v12  ;;  %v642_v19 = vadd.f32 %v641_v17, %v640_v13  ;;  %v478_v20 = vadd.f32 %v477_v18, %v381_v15  ;;  %v394_v23 = vadd.f32 %v639_v11, %v934_v2 }
 0x10a   :  { %541 = vst.msk [vmem:[%s1023_s3 + $0x18] sm:$0xff] %vm537_vm1, %v486_v16 }
 0x10b   :  { %539 = vst.msk [vmem:[%s1023_s3 + $0x8] sm:$0xff] %vm537_vm1, %v478_v20  ;;  %v397_v30 = vadd.f32 %v642_v19, %v934_v2 }
 0x10d   :  { %v643_v21 = vpop.f32.mrb[12].mxu0  ;;  %v693_v22 = vpop.f32.mrb[12].mxu1 }
 0x10e   :  { %v644_v24 = vpop.f32.mrb[13].mxu0  ;;  %v490_v25 = vpop.f32.mrb[13].mxu1 }
 0x10f   :  { %v645_v26 = vadd.f32 %v644_v24, %v643_v21  ;;  %v491_v27 = vadd.f32 %v490_v25, %v394_v23  ;;  %v646_v28 = vpop.f32.mrb[14].mxu0  ;;  %v694_v29 = vpop.f32.mrb[14].mxu1 }
 0x110   :  { %v647_v31 = vpop.f32.mrb[15].mxu0  ;;  %v493_v32 = vpop.f32.mrb[15].mxu1 }
 0x111   :  { %v402_v33 = vadd.f32 %v645_v26, %v934_v2  ;;  %542 = vst.msk [vmem:[%s1023_s3 + $0x20] sm:$0xff] %vm537_vm1, %v491_v27  ;;  %v648_v34 = vadd.f32 %v647_v31, %v646_v28  ;;  %v494_v35 = vadd.f32 %v493_v32, %v397_v30 }
 0x113   :  { %v499_v36 = vadd.f32 %v693_v22, %v402_v33  ;;  %v405_v37 = vadd.f32 %v648_v34, %v934_v2  ;;  %543 = vst.msk [vmem:[%s1023_s3 + $0x28] sm:$0xff] %vm537_vm1, %v494_v35 }
 0x115   :  { %544 = vst.msk [vmem:[%s1023_s3 + $0x30] sm:$0xff] %vm537_vm1, %v499_v36  ;;  %v502_v38 = vadd.f32 %v694_v29, %v405_v37  ;;  %v649_v39 = vpop.f32.mrb[16].mxu0  ;;  %v697_v40 = vpop.f32.mrb[16].mxu1 }
 0x116   :  { %v650_v41 = vpop.f32.mrb[17].mxu0  ;;  %v506_v42 = vpop.f32.mrb[17].mxu1 }
 0x117   :  { %545 = vst.msk [vmem:[%s1023_s3 + $0x38] sm:$0xff] %vm537_vm1, %v502_v38  ;;  %v651_v43 = vadd.f32 %v650_v41, %v649_v39  ;;  %v652_v44 = vpop.f32.mrb[18].mxu0  ;;  %v698_v45 = vpop.f32.mrb[18].mxu1 }
 0x118   :  { %v653_v46 = vpop.f32.mrb[19].mxu0  ;;  %v509_v47 = vpop.f32.mrb[19].mxu1 }
 0x119   :  { %v410_v49 = vadd.f32 %v651_v43, %v934_v2  ;;  %v654_v50 = vadd.f32 %v653_v46, %v652_v44 }
 0x11b   :  { %v507_v51 = vadd.f32 %v506_v42, %v410_v49  ;;  %v413_v52 = vadd.f32 %v654_v50, %v934_v2 }
 0x11d   :  { %546 = vst.msk [vmem:[%s1023_s3 + $0x40] sm:$0xff] %vm537_vm1, %v507_v51  ;;  %v510_v55 = vadd.f32 %v509_v47, %v413_v52  ;;  %v655_v56 = vpop.f32.mrb[20].mxu0  ;;  %v701_v57 = vpop.f32.mrb[20].mxu1 }
 0x11e   :  { %v531_v59 = vadd.f32 %v701_v57, %v434_v54  ;;  %v656_v61 = vpop.f32.mrb[21].mxu0  ;;  %v522_v62 = vpop.f32.mrb[21].mxu1 }
 0x11f   :  { %547 = vst.msk [vmem:[%s1023_s3 + $0x48] sm:$0xff] %vm537_vm1, %v510_v55  ;;  %v657_v60 = vadd.f32 %v656_v61, %v655_v56  ;;  %v523_v0 = vadd.f32 %v522_v62, %v426_v58  ;;  %v658_v3 = vpop.f32.mrb[22].mxu0  ;;  %v702_v4 = vpop.f32.mrb[22].mxu1 }
 0x120   :  { %552 = vst.msk [vmem:[%s1023_s3 + $0x70] sm:$0xff] %vm537_vm1, %v531_v59  ;;  %v534_v48 = vadd.f32 %v702_v4, %v437_v63  ;;  %v659_v6 = vpop.f32.mrb[23].mxu0  ;;  %v525_v1 = vpop.f32.mrb[23].mxu1 }
 0x121   :  { %v418_v7 = vadd.f32 %v657_v60, %v934_v2  ;;  %550 = vst.msk [vmem:[%s1023_s3 + $0x60] sm:$0xff] %vm537_vm1, %v523_v0  ;;  %v660_v8 = vadd.f32 %v659_v6, %v658_v3  ;;  %v526_v9 = vadd.f32 %v525_v1, %v429_v5 }
 0x122   :  { %553 = vst.msk [vmem:[%s1023_s3 + $0x78] sm:$0xff] %vm537_vm1, %v534_v48 }
 0x123   :  { %v515_v53 = vadd.f32 %v697_v40, %v418_v7  ;;  %v421_v10 = vadd.f32 %v660_v8, %v934_v2  ;;  %551 = vst.msk [vmem:[%s1023_s3 + $0x68] sm:$0xff] %vm537_vm1, %v526_v9 }
 0x125   :  { %548 = vst.msk [vmem:[%s1023_s3 + $0x50] sm:$0xff] %vm537_vm1, %v515_v53  ;;  %v518_v11 = vadd.f32 %v698_v45, %v421_v10 }
 0x127   :  { %549 = vst.msk [vmem:[%s1023_s3 + $0x58] sm:$0xff] %vm537_vm1, %v518_v11 }

// kernel: lanenet_forward.13
= control target key start
LH: loop header
LB: loop body
LE: loop exit
PB: predicated region body
PF: predicated region fallthrough
CT: control target
= control target key end

     0   :  { %s520_s12 = smov 0   ;;  %s522_s13 = smov 0   ;;  %s568_s0 = inlined_call_operand.vmem [shape: f32[2,2,8,8], index: 0, kind: input, shape index: {}]   ;;  %s569_s1 = inlined_call_operand.vmem [shape: f32[2,3,8,8], index: 1, kind: input, shape index: {}]   ;;  %s570_s2 = inlined_call_operand.vmem [shape: s32[2,1,8,8], index: 2, kind: output, shape index: {0}]   ;;  %s571_s3 = inlined_call_operand.vmem [shape: f32[2,3,8,8], index: 3, kind: output, shape index: {1}]  }
   0x1   :  { %s524_s14 = smov 0  }
   0x2 LB: > { %s26_s15 = sadd.s32 1, %s493_s13  ;;  %p428_p0 = scmp.ge.s32.totalorder %s497_s14, 1  ;;  %s497_s14 = sphi %s524_s14, %s14_s14   ;;  %s493_s13 = sphi %s522_s13, %s573_s13   ;;  %s489_s12 = sphi %s520_s12, %s572_s12  }
   0x3   : > { %p28_p1 = scmp.ge.s32.totalorder %s26_s15, 2  ;;  %p176_p2 = scmp.lt.s32.totalorder %s497_s14, 3 }
   0x5   : > { %s575_s15 = smov (%p28_p1, %s26_s15), 0  ;;  %p177_p3 = pnand %p428_p0, %p176_p2 }
   0x6   : > { %p221_p4 = scmp.lt.s32.totalorder (!%p177_p3), %s489_s12, 1  ;;  %vm256_vm0 = vcmask (!%p177_p3), 64512   ;;  %v499_v2 = vmov (!%p177_p3), 0  }
   0x7   : > { %180 = sbr.rel (%p177_p3) target bundleno = 52 (0x34), region = 28 }
   0xe   : > { %s577_s12 = smov (!%p221_p4, %s489_s12), 1 }
   0xf   : > { %s436_s16 = sshll.u32 %s577_s12, 4  ;;  %s432_s17 = sshll.u32 %s577_s12, 3 }
  0x10   : > { %s228_s20 = scalar_lea.vmem %s568_s0, %s436_s16  ;;  %s243_s23 = scalar_lea.vmem %s570_s2, %s432_s17 }
  0x11   : > { %v252_v0 = vld [vmem:[%s228_s20] sm:$0xff]  ;;  %v253_v1 = vld [vmem:[%s228_s20 + $0x8] sm:$0xff]  ;;  %s437_s24 = smul.u32 24, %s577_s12 }
  0x12   : > { %vm254_vm1 = vcmp.gt.f32.partialorder %v253_v1, %v252_v0 }
  0x13   : > { %v255_v3 = vsel %vm254_vm1, 1, %v499_v2  ;;  %s236_s27 = scalar_lea.vmem %s569_s1, %s437_s24  ;;  %s251_s30 = scalar_lea.vmem %s571_s3, %s437_s24 }
  0x14   : > { %257 = vst.msk [vmem:[%s243_s23] sm:$0xff] %vm256_vm0, %v255_v3  ;;  %v258_v4 = vld [vmem:[%s236_s27] sm:$0xff]  ;;  %v259_v5 = vld [vmem:[%s236_s27 + $0x8] sm:$0xff]  ;;  %v260_v6 = vld [vmem:[%s236_s27 + $0x10] sm:$0xff] }
  0x15   : > { %v261_v7 = vsub.f32 0.0, %v258_v4  ;;  %v262_v8 = vsub.f32 0.0, %v259_v5  ;;  %v263_v9 = vsub.f32 0.0, %v260_v6 }
  0x17   : > { %v264_v10 = vmul.f32 1.442695, %v261_v7  ;;  %v266_v11 = vmul.f32 1.442695, %v262_v8  ;;  %v268_v12 = vmul.f32 1.442695, %v263_v9 }
  0x19   : > { %463 = vpow2.f32 %v264_v10 }
  0x1a   : > { %465 = vpow2.f32 %v266_v11 }
  0x1b   : > { %467 = vpow2.f32 %v268_v12 }
  0x23   : > { %v464_v13 = vpop.eup %463 }
  0x24   : > { %v466_v14 = vpop.eup %465  ;;  %v270_v15 = vadd.f32 1.0, %v464_v13 }
  0x25   : > { %v468_v16 = vpop.eup %467  ;;  %v271_v17 = vadd.f32 1.0, %v466_v14 }
  0x26   : > { %v272_v18 = vadd.f32 1.0, %v468_v16  ;;  %469 = vrcp.f32 %v270_v15 }
  0x27   : > { %471 = vrcp.f32 %v271_v17 }
  0x28   : > { %473 = vrcp.f32 %v272_v18 }
  0x30   : > { %v470_v19 = vpop.eup %469 }
  0x31   : > { %v472_v20 = vpop.eup %471  ;;  %279 = vst.msk [vmem:[%s251_s30] sm:$0xff] %vm256_vm0, %v470_v19 }
  0x32   : > { %v474_v21 = vpop.eup %473  ;;  %280 = vst.msk [vmem:[%s251_s30 + $0x8] sm:$0xff] %vm256_vm0, %v472_v20 }
  0x33   : > { %281 = vst.msk [vmem:[%s251_s30 + $0x10] sm:$0xff] %vm256_vm0, %v474_v21 }
  0x34 PF: > { %s14_s14 = sadd.s32 1, %s497_s14   ;;  %s572_s12 = smov %s493_s13 }
  0x35   : > { %p11_p5 = scmp.ge.s32.totalorder %s14_s14, 4   ;;  %s573_s13 = smov %s575_s15 }
  0x37   :  { %13 = sbr.rel (!%p11_p5) target bundleno = 2 (0x2), region = 73 }

</bundles_post_ra>
